<compile_context>
chip_gen: v6e
topology: v6e:2x2x1
jax: 0.10.0
libtpu: 0.0.40
codegen_flags: <defaults>
</compile_context>

<pallas_src>
import functools

import jax
import jax.numpy as jnp
from jax import lax
from jax.experimental import pallas as pl
from jax.experimental.pallas import tpu as pltpu


def _uniform_bits(idx_u32, seed_u32):
    """lowbias32 integer mixer: well-distributed uint32 from counter ^ seed."""
    x = idx_u32 ^ seed_u32
    x = x ^ (x >> 16)
    x = x * jnp.uint32(0x7FEB352D)
    x = x ^ (x >> 15)
    x = x * jnp.uint32(0x846CA68B)
    x = x ^ (x >> 16)
    return x


def _attn_dropout_kernel(seed_ref, q_ref, k_ref, v_ref, o_ref,
                         m_scr, l_scr, acc_scr,
                         *, scale, drop_p, seq_len, tq, tkv):
    b = pl.program_id(0)
    qi = pl.program_id(1)
    ki = pl.program_id(2)

    @pl.when(ki == 0)
    def _init():
        m_scr[...] = jnp.full(m_scr.shape, -jnp.inf, dtype=jnp.float32)
        l_scr[...] = jnp.zeros(l_scr.shape, dtype=jnp.float32)
        acc_scr[...] = jnp.zeros(acc_scr.shape, dtype=jnp.float32)

    q = q_ref[0, :, :]                       # (TQ, D)
    if scale != 1.0:
        q = q * scale                        # fold scale into q: TQ*D mults, not TQ*TKV
    k = k_ref[0, :, :]                       # (TKV, D)
    v = v_ref[0, :, :]                       # (TKV, D)

    # s = q @ k^T  -> (TQ, TKV): one big 2-D MXU dot, f32 accumulation.
    s = lax.dot_general(q, k, (((1,), (1,)), ((), ())),
                        preferred_element_type=jnp.float32)

    # Online softmax update.
    m_prev = m_scr[...]                                            # (TQ, 1)
    m_new = jnp.maximum(m_prev, jnp.max(s, axis=-1, keepdims=True))
    alpha = jnp.exp(m_prev - m_new)                                # (TQ, 1)
    e = jnp.exp(s - m_new)                                         # (TQ, TKV)
    l_scr[...] = alpha * l_scr[...] + jnp.sum(e, axis=-1, keepdims=True)
    m_scr[...] = m_new

    # Dropout mask on the (unnormalized) probabilities.  The 1/(1-p) rescale is
    # folded into the final normalization, so this is a pure mask here.
    if drop_p > 0.0:
        rows = qi * tq + lax.broadcasted_iota(jnp.int32, (tq, tkv), 0)
        cols = ki * tkv + lax.broadcasted_iota(jnp.int32, (tq, tkv), 1)
        idx = (b * seq_len + rows) * seq_len + cols       # unique per element
        bits = _uniform_bits(idx.astype(jnp.uint32),
                             seed_ref[0].astype(jnp.uint32))
        threshold = jnp.uint32(int(round(drop_p * 2.0 ** 32)))
        e = jnp.where(bits >= threshold, e, 0.0)          # single uint compare

    # acc = alpha * acc + masked_e @ v  -> (TQ, D), 2-D MXU dot, f32 accumulate.
    acc_scr[...] = alpha * acc_scr[...] + lax.dot_general(
        e, v, (((1,), (0,)), ((), ())), preferred_element_type=jnp.float32)

    @pl.when(ki == pl.num_programs(2) - 1)
    def _finalize():
        # One reciprocal per row; dropout's 1/(1-p) folded in here.
        # (On TPU-only builds pl.reciprocal(..., approx=True) would route this
        #  to the EUP; plain divide keeps the kernel portable to interpret.)
        inv = 1.0 / (l_scr[...] * (1.0 - drop_p))
        o_ref[0, :, :] = (acc_scr[...] * inv).astype(o_ref.dtype)


def attention_dropout(q, k, v, seed, *, scale_factor=1.0, drop_p=0.2,
                      block_q=128, block_kv=128):
    """q, k, v: (B, S, D) float32. seed: (1,) int32. Returns (B, S, D) float32."""
    B, S, D = q.shape
    tq = min(block_q, S)
    tkv = min(block_kv, S)
    if S % tq or S % tkv:
        raise ValueError(f"seq len {S} must be divisible by blocks ({tq}, {tkv})")

    grid = (B, S // tq, S // tkv)
    kernel = functools.partial(
        _attn_dropout_kernel, scale=float(scale_factor), drop_p=float(drop_p),
        seq_len=S, tq=tq, tkv=tkv)

    grid_spec = pltpu.PrefetchScalarGridSpec(
        num_scalar_prefetch=1,           # seed lands in SMEM, off the tensor DMA path
        grid=grid,
        in_specs=[
            pl.BlockSpec((1, tq, D), lambda b, qi, ki, *_: (b, qi, 0)),   # q
            pl.BlockSpec((1, tkv, D), lambda b, qi, ki, *_: (b, ki, 0)),  # k
            pl.BlockSpec((1, tkv, D), lambda b, qi, ki, *_: (b, ki, 0)),  # v
        ],
        out_specs=pl.BlockSpec((1, tq, D), lambda b, qi, ki, *_: (b, qi, 0)),
        scratch_shapes=[
            pltpu.VMEM((tq, 1), jnp.float32),   # running row max
            pltpu.VMEM((tq, 1), jnp.float32),   # running row sum
            pltpu.VMEM((tq, D), jnp.float32),   # f32 output accumulator
        ],
    )

    compiler_params_cls = (getattr(pltpu, "CompilerParams", None)
                           or getattr(pltpu, "TPUCompilerParams"))
    return pl.pallas_call(
        kernel,
        out_shape=jax.ShapeDtypeStruct((B, S, D), q.dtype),
        grid_spec=grid_spec,
        compiler_params=compiler_params_cls(
            dimension_semantics=("parallel", "parallel", "arbitrary")),
    )(seed, q, k, v)


def _reference(q, k, v, seed, *, scale_factor=1.0, drop_p=0.2):
    """Pure-JAX reference with the identical deterministic dropout mask."""
    B, S, _ = q.shape
    s = jnp.einsum("bqd,bkd->bqk", q, k) * scale_factor
    p = jax.nn.softmax(s, axis=-1)
    bidx = jnp.arange(B, dtype=jnp.int32)[:, None, None]
    rows = jnp.arange(S, dtype=jnp.int32)[None, :, None]
    cols = jnp.arange(S, dtype=jnp.int32)[None, None, :]
    idx = (bidx * S + rows) * S + cols
    bits = _uniform_bits(idx.astype(jnp.uint32), seed[0].astype(jnp.uint32))
    threshold = jnp.uint32(int(round(drop_p * 2.0 ** 32)))
    p = jnp.where(bits >= threshold, p / (1.0 - drop_p), 0.0)
    return jnp.einsum("bqk,bkd->bqd", p, v)


if __name__ == "__main__":
    # (batch, seq, head_dim) as implied by the module's q/k/v inputs, sized so
    # the grid/tiling is actually exercised (2 x 2 x 2 grid of 128-tiles).
    B, S, D = 2, 256, 128
    key = jax.random.PRNGKey(0)
    kq, kk, kv = jax.random.split(key, 3)
    q = jax.random.normal(kq, (B, S, D), dtype=jnp.float32)
    k = jax.random.normal(kk, (B, S, D), dtype=jnp.float32)
    v = jax.random.normal(kv, (B, S, D), dtype=jnp.float32)
    seed = jnp.array([1234], dtype=jnp.int32)

    out = attention_dropout(q, k, v, seed, scale_factor=1.0, drop_p=0.2)
    out = jax.block_until_ready(out)
    assert out.shape == (B, S, D) and out.dtype == jnp.float32

    ref = _reference(q, k, v, seed, scale_factor=1.0, drop_p=0.2)
    max_err = float(jnp.max(jnp.abs(out - ref)))
    assert max_err < 1e-3, f"max |err| = {max_err}"
    print("KERNEL_OK")
</pallas_src>

<mosaic_0001>
module attributes {stable_mosaic.version = 11 : i64} {
  func.func @_attn_dropout_kernel(%arg0: i32, %arg1: i32, %arg2: i32, %arg3: memref<1xi32, #tpu.memory_space<smem>>, %arg4: memref<1x128x128xf32, #tpu.memory_space<vmem>>, %arg5: memref<1x128x128xf32, #tpu.memory_space<vmem>>, %arg6: memref<1x128x128xf32, #tpu.memory_space<vmem>>, %arg7: memref<1x128x128xf32, #tpu.memory_space<vmem>>, %arg8: memref<128x1xf32, #tpu.memory_space<vmem>>, %arg9: memref<128x1xf32, #tpu.memory_space<vmem>>, %arg10: memref<128x128xf32, #tpu.memory_space<vmem>>) attributes {dimension_semantics = [#tpu.dimension_semantics<parallel>, #tpu.dimension_semantics<parallel>, #tpu.dimension_semantics<arbitrary>], iteration_bounds = array<i64: 2, 2, 2>, scalar_prefetch = 1 : i64, scratch_operands = 3 : i64, tpu.core_type = #tpu.core_type<tc>, window_params = [{transform_indices = @transform_0, window_bounds = array<i64: 1, 128, 128>}, {transform_indices = @transform_1, window_bounds = array<i64: 1, 128, 128>}, {transform_indices = @transform_2, window_bounds = array<i64: 1, 128, 128>}, {transform_indices = @transform_3, window_bounds = array<i64: 1, 128, 128>}]} {
    %c0_i32 = arith.constant 0 : i32
    %0 = arith.cmpi eq, %arg2, %c0_i32 : i32
    %1 = arith.extui %0 : i1 to i32
    %c0_i32_0 = arith.constant 0 : i32
    %2 = arith.cmpi ne, %1, %c0_i32_0 : i32
    scf.if %2 {
      %cst_30 = arith.constant 0xFF800000 : f32
      %69 = vector.broadcast %cst_30 : f32 to vector<128x1xf32>
      %c0_31 = arith.constant 0 : index
      %c0_32 = arith.constant 0 : index
      %70 = vector.load %arg8[%c0_31, %c0_32] : memref<128x1xf32, #tpu.memory_space<vmem>>, vector<128x1xf32>
      tpu.vector_store %arg8[%c0_31, %c0_32], %69 {strides = array<i32>} : memref<128x1xf32, #tpu.memory_space<vmem>>, vector<128x1xf32>,
      %cst_33 = arith.constant 0.000000e+00 : f32
      %71 = vector.broadcast %cst_33 : f32 to vector<128x1xf32>
      %c0_34 = arith.constant 0 : index
      %c0_35 = arith.constant 0 : index
      %72 = vector.load %arg9[%c0_34, %c0_35] : memref<128x1xf32, #tpu.memory_space<vmem>>, vector<128x1xf32>
      tpu.vector_store %arg9[%c0_34, %c0_35], %71 {strides = array<i32>} : memref<128x1xf32, #tpu.memory_space<vmem>>, vector<128x1xf32>,
      %cst_36 = arith.constant 0.000000e+00 : f32
      %73 = vector.broadcast %cst_36 : f32 to vector<128x128xf32>
      %c0_37 = arith.constant 0 : index
      %c0_38 = arith.constant 0 : index
      %74 = vector.load %arg10[%c0_37, %c0_38] : memref<128x128xf32, #tpu.memory_space<vmem>>, vector<128x128xf32>
      tpu.vector_store %arg10[%c0_37, %c0_38], %73 {strides = array<i32>} : memref<128x128xf32, #tpu.memory_space<vmem>>, vector<128x128xf32>,
    } else {
    }
    %c0 = arith.constant 0 : index
    %c0_1 = arith.constant 0 : index
    %c0_2 = arith.constant 0 : index
    %3 = vector.load %arg4[%c0, %c0_1, %c0_2] : memref<1x128x128xf32, #tpu.memory_space<vmem>>, vector<1x128x128xf32>
    %4 = vector.shape_cast %3 : vector<1x128x128xf32> to vector<128x128xf32>
    %c0_3 = arith.constant 0 : index
    %c0_4 = arith.constant 0 : index
    %c0_5 = arith.constant 0 : index
    %5 = vector.load %arg5[%c0_3, %c0_4, %c0_5] : memref<1x128x128xf32, #tpu.memory_space<vmem>>, vector<1x128x128xf32>
    %6 = vector.shape_cast %5 : vector<1x128x128xf32> to vector<128x128xf32>
    %c0_6 = arith.constant 0 : index
    %c0_7 = arith.constant 0 : index
    %c0_8 = arith.constant 0 : index
    %7 = vector.load %arg6[%c0_6, %c0_7, %c0_8] : memref<1x128x128xf32, #tpu.memory_space<vmem>>, vector<1x128x128xf32>
    %8 = vector.shape_cast %7 : vector<1x128x128xf32> to vector<128x128xf32>
    %cst = arith.constant dense<0.000000e+00> : vector<128x128xf32>
    %9 = tpu.matmul %4, %6, %cst {dimension_numbers = #tpu.dot_dimension_numbers<[1], [1], [0], [0], [0, 0, 1, 0], [], []>} : vector<128x128xf32>, vector<128x128xf32>, vector<128x128xf32> -> vector<128x128xf32>
    %c0_9 = arith.constant 0 : index
    %c0_10 = arith.constant 0 : index
    %10 = vector.load %arg8[%c0_9, %c0_10] : memref<128x1xf32, #tpu.memory_space<vmem>>, vector<128x1xf32>
    %cst_11 = arith.constant dense<0xFF800000> : vector<128xf32>
    %11 = vector.multi_reduction <maximumf>, %9, %cst_11 [1] : vector<128x128xf32> to vector<128xf32>
    %12 = vector.shape_cast %11 : vector<128xf32> to vector<128x1xf32>
    %13 = arith.maximumf %10, %12 : vector<128x1xf32>
    %14 = arith.subf %10, %13 : vector<128x1xf32>
    %15 = math.exp %14 : vector<128x1xf32>
    %16 = vector.broadcast %13 : vector<128x1xf32> to vector<128x128xf32>
    %17 = arith.subf %9, %16 : vector<128x128xf32>
    %18 = math.exp %17 : vector<128x128xf32>
    %c0_12 = arith.constant 0 : index
    %c0_13 = arith.constant 0 : index
    %19 = vector.load %arg9[%c0_12, %c0_13] : memref<128x1xf32, #tpu.memory_space<vmem>>, vector<128x1xf32>
    %20 = arith.mulf %15, %19 : vector<128x1xf32>
    %cst_14 = arith.constant dense<0.000000e+00> : vector<128xf32>
    %21 = vector.multi_reduction <add>, %18, %cst_14 [1] : vector<128x128xf32> to vector<128xf32>
    %22 = vector.shape_cast %21 : vector<128xf32> to vector<128x1xf32>
    %23 = arith.addf %20, %22 : vector<128x1xf32>
    %c0_15 = arith.constant 0 : index
    %c0_16 = arith.constant 0 : index
    %24 = vector.load %arg9[%c0_15, %c0_16] : memref<128x1xf32, #tpu.memory_space<vmem>>, vector<128x1xf32>
    tpu.vector_store %arg9[%c0_15, %c0_16], %23 {strides = array<i32>} : memref<128x1xf32, #tpu.memory_space<vmem>>, vector<128x1xf32>,
    %c0_17 = arith.constant 0 : index
    %c0_18 = arith.constant 0 : index
    %25 = vector.load %arg8[%c0_17, %c0_18] : memref<128x1xf32, #tpu.memory_space<vmem>>, vector<128x1xf32>
    tpu.vector_store %arg8[%c0_17, %c0_18], %13 {strides = array<i32>} : memref<128x1xf32, #tpu.memory_space<vmem>>, vector<128x1xf32>,
    %c128_i32 = arith.constant 128 : i32
    %26 = arith.muli %arg1, %c128_i32 : i32
    %27 = tpu.iota {dimensions = array<i32: 0>} : vector<128x128xi32>
    %28 = vector.broadcast %26 : i32 to vector<128x128xi32>
    %29 = arith.addi %28, %27 : vector<128x128xi32>
    %c128_i32_19 = arith.constant 128 : i32
    %30 = arith.muli %arg2, %c128_i32_19 : i32
    %31 = tpu.iota {dimensions = array<i32: 1>} : vector<128x128xi32>
    %32 = vector.broadcast %30 : i32 to vector<128x128xi32>
    %33 = arith.addi %32, %31 : vector<128x128xi32>
    %c256_i32 = arith.constant 256 : i32
    %34 = arith.muli %arg0, %c256_i32 : i32
    %35 = vector.broadcast %34 : i32 to vector<128x128xi32>
    %36 = arith.addi %35, %29 : vector<128x128xi32>
    %c256_i32_20 = arith.constant 256 : i32
    %37 = vector.broadcast %c256_i32_20 : i32 to vector<128x128xi32>
    %38 = arith.muli %36, %37 : vector<128x128xi32>
    %39 = arith.addi %38, %33 : vector<128x128xi32>
    %c0_21 = arith.constant 0 : index
    %40 = memref.load %arg3[%c0_21] : memref<1xi32, #tpu.memory_space<smem>>
    %41 = vector.broadcast %40 : i32 to vector<128x128xi32>
    %42 = arith.xori %39, %41 : vector<128x128xi32>
    %c16_i32 = arith.constant 16 : i32
    %43 = vector.broadcast %c16_i32 : i32 to vector<128x128xi32>
    %44 = arith.shrui %42, %43 : vector<128x128xi32>
    %45 = arith.xori %42, %44 : vector<128x128xi32>
    %c2146121005_i32 = arith.constant 2146121005 : i32
    %46 = vector.broadcast %c2146121005_i32 : i32 to vector<128x128xi32>
    %47 = arith.muli %45, %46 : vector<128x128xi32>
    %c15_i32 = arith.constant 15 : i32
    %48 = vector.broadcast %c15_i32 : i32 to vector<128x128xi32>
    %49 = arith.shrui %47, %48 : vector<128x128xi32>
    %50 = arith.xori %47, %49 : vector<128x128xi32>
    %c-2073254261_i32 = arith.constant -2073254261 : i32
    %51 = vector.broadcast %c-2073254261_i32 : i32 to vector<128x128xi32>
    %52 = arith.muli %50, %51 : vector<128x128xi32>
    %c16_i32_22 = arith.constant 16 : i32
    %53 = vector.broadcast %c16_i32_22 : i32 to vector<128x128xi32>
    %54 = arith.shrui %52, %53 : vector<128x128xi32>
    %55 = arith.xori %52, %54 : vector<128x128xi32>
    %c858993459_i32 = arith.constant 858993459 : i32
    %56 = vector.broadcast %c858993459_i32 : i32 to vector<128x128xi32>
    %57 = arith.cmpi uge, %55, %56 : vector<128x128xi32>
    %cst_23 = arith.constant 0.000000e+00 : f32
    %58 = vector.broadcast %cst_23 : f32 to vector<128x128xf32>
    %59 = arith.select %57, %18, %58 : vector<128x128xi1>, vector<128x128xf32>
    %c0_24 = arith.constant 0 : index
    %c0_25 = arith.constant 0 : index
    %60 = vector.load %arg10[%c0_24, %c0_25] : memref<128x128xf32, #tpu.memory_space<vmem>>, vector<128x128xf32>
    %61 = vector.broadcast %15 : vector<128x1xf32> to vector<128x128xf32>
    %62 = arith.mulf %61, %60 : vector<128x128xf32>
    %cst_26 = arith.constant dense<0.000000e+00> : vector<128x128xf32>
    %63 = tpu.matmul %59, %8, %cst_26 {dimension_numbers = #tpu.dot_dimension_numbers<[1], [0], [0], [1], [0, 0, 1, 1], [], []>} : vector<128x128xf32>, vector<128x128xf32>, vector<128x128xf32> -> vector<128x128xf32>
    %64 = arith.addf %62, %63 : vector<128x128xf32>
    %c0_27 = arith.constant 0 : index
    %c0_28 = arith.constant 0 : index
    %65 = vector.load %arg10[%c0_27, %c0_28] : memref<128x128xf32, #tpu.memory_space<vmem>>, vector<128x128xf32>
    tpu.vector_store %arg10[%c0_27, %c0_28], %64 {strides = array<i32>} : memref<128x128xf32, #tpu.memory_space<vmem>>, vector<128x128xf32>,
    %c1_i32 = arith.constant 1 : i32
    %66 = arith.cmpi eq, %arg2, %c1_i32 : i32
    %67 = arith.extui %66 : i1 to i32
    %c0_i32_29 = arith.constant 0 : i32
    %68 = arith.cmpi ne, %67, %c0_i32_29 : i32
    scf.if %68 {
      %c0_30 = arith.constant 0 : index
      %c0_31 = arith.constant 0 : index
      %69 = vector.load %arg9[%c0_30, %c0_31] : memref<128x1xf32, #tpu.memory_space<vmem>>, vector<128x1xf32>
      %cst_32 = arith.constant 8.000000e-01 : f32
      %70 = vector.broadcast %cst_32 : f32 to vector<128x1xf32>
      %71 = arith.mulf %69, %70 : vector<128x1xf32>
      %cst_33 = arith.constant 1.000000e+00 : f32
      %72 = vector.broadcast %cst_33 : f32 to vector<128x1xf32>
      %73 = arith.divf %72, %71 : vector<128x1xf32>
      %c0_34 = arith.constant 0 : index
      %c0_35 = arith.constant 0 : index
      %74 = vector.load %arg10[%c0_34, %c0_35] : memref<128x128xf32, #tpu.memory_space<vmem>>, vector<128x128xf32>
      %75 = vector.broadcast %73 : vector<128x1xf32> to vector<128x128xf32>
      %76 = arith.mulf %74, %75 : vector<128x128xf32>
      %c0_36 = arith.constant 0 : index
      %c0_37 = arith.constant 0 : index
      %c0_38 = arith.constant 0 : index
      %77 = vector.load %arg7[%c0_36, %c0_37, %c0_38] : memref<1x128x128xf32, #tpu.memory_space<vmem>>, vector<1x128x128xf32>
      %78 = vector.shape_cast %77 : vector<1x128x128xf32> to vector<128x128xf32>
      %79 = vector.shape_cast %76 : vector<128x128xf32> to vector<1x128x128xf32>
      tpu.vector_store %arg7[%c0_36, %c0_37, %c0_38], %79 {strides = array<i32>} : memref<1x128x128xf32, #tpu.memory_space<vmem>>, vector<1x128x128xf32>,
    } else {
    }
    return
  }
  func.func @transform_0(%arg0: i32, %arg1: i32, %arg2: i32, %arg3: memref<1xi32, #tpu.memory_space<smem>>) -> (i32, i32, i32) {
    %c0_i32 = arith.constant 0 : i32
    %c0_i32_0 = arith.constant 0 : i32
    return %arg0, %arg1, %c0_i32 : i32, i32, i32
  }
  func.func @transform_1(%arg0: i32, %arg1: i32, %arg2: i32, %arg3: memref<1xi32, #tpu.memory_space<smem>>) -> (i32, i32, i32) {
    %c0_i32 = arith.constant 0 : i32
    %c0_i32_0 = arith.constant 0 : i32
    return %arg0, %arg2, %c0_i32 : i32, i32, i32
  }
  func.func @transform_2(%arg0: i32, %arg1: i32, %arg2: i32, %arg3: memref<1xi32, #tpu.memory_space<smem>>) -> (i32, i32, i32) {
    %c0_i32 = arith.constant 0 : i32
    %c0_i32_0 = arith.constant 0 : i32
    return %arg0, %arg2, %c0_i32 : i32, i32, i32
  }
  func.func @transform_3(%arg0: i32, %arg1: i32, %arg2: i32, %arg3: memref<1xi32, #tpu.memory_space<smem>>) -> (i32, i32, i32) {
    %c0_i32 = arith.constant 0 : i32
    %c0_i32_0 = arith.constant 0 : i32
    return %arg0, %arg1, %c0_i32 : i32, i32, i32
  }
}

</mosaic_0001>

<bundles_post_ra>
// kernel: tpu_custom_call.1
= control target key start
LH: loop header
LB: loop body
LE: loop exit
PB: predicated region body
PF: predicated region fallthrough
CT: control target
= control target key end

     0   :  { %s3464_s0 = inlined_call_operand.<no memory space> [shape: s32[1], index: 0, kind: input, shape index: {}]   ;;  %s3465_s1 = inlined_call_operand.hbm [shape: f32[2,256,128], index: 1, kind: input, shape index: {}]   ;;  %s3466_s2 = inlined_call_operand.hbm [shape: f32[2,256,128], index: 2, kind: input, shape index: {}]   ;;  %s3467_s3 = inlined_call_operand.hbm [shape: f32[2,256,128], index: 3, kind: input, shape index: {}]   ;;  %s3468_s4 = inlined_call_operand.hbm [shape: f32[2,256,128], index: 4, kind: output, shape index: {}]  }
   0x1   :  { %3501 = sst [smem:[#allocation38_spill]] %s3466_s2 }
   0x2   :  { %3502 = sst [smem:[#allocation39_spill]] %s3467_s3 }
   0x3   :  { %3503 = sst [smem:[#allocation40_spill]] %s3468_s4 }
   0x4   :  { %9 = sst [smem:[#allocation6]] %s3464_s0 }
   0x5   :  { %10 = vsyncpa [#allocation8], 0 }
   0x6   :  { %12 = vsyncpa [#allocation8 + $0x1], 0 }
   0x7   :  { %13 = vsyncpa [#allocation11], 0 }
   0x8   :  { %15 = vsyncpa [#allocation11 + $0x1], 0 }
   0x9   :  { %16 = vsyncpa [#allocation9], 0 }
   0xa   :  { %18 = vsyncpa [#allocation9 + $0x1], 0  ;;  %s2544_s17 = smov 0   ;;  %s2546_s18 = smov 0  }
   0xb   :  { %s2548_s19 = smov 0   ;;  %s2550_s20 = smov 0  }
   0xc   :  { %s2552_s21 = smov 0   ;;  %s2554_s22 = smov 0  }
   0xd   :  { %s2556_s23 = smov 0   ;;  %s2558_s0 = smov 0  }
   0xe   :  { %s2560_s24 = smov 0   ;;  %s2562_s25 = smov 0  }
   0xf   :  { %s2564_s26 = smov 0   ;;  %s2566_s27 = smov 0  }
  0x10   :  { %s2568_s28 = smov 0  }
  0x11 LB: > { %3504 = sst [smem:[#allocation17_spill]] %s2458_s18  ;;  %s2608_s29 = sadd.s32 4294967295, %s2502_s28   ;;  %s2502_s28 = sphi %s2568_s28, %s24_s28   ;;  %s2498_s27 = sphi %s2566_s27, %s3589_s27   ;;  %s2494_s26 = sphi %s2564_s26, %s3578_s26   ;;  %s2490_s25 = sphi %s2562_s25, %s3588_s25   ;;  %s2486_s24 = sphi %s2560_s24, %s3587_s24   ;;  %s2482_s0 = sphi %s2558_s0, %s3586_s0   ;;  %s2478_s23 = sphi %s2556_s23, %s3585_s23   ;;  %s2474_s22 = sphi %s2554_s22, %s3584_s22   ;;  %s2470_s21 = sphi %s2552_s21, %s3583_s21   ;;  %s2466_s20 = sphi %s2550_s20, %s3575_s20   ;;  %s2462_s19 = sphi %s2548_s19, %s3582_s19   ;;  %s2458_s18 = sphi %s2546_s18, %s3581_s18   ;;  %s2454_s17 = sphi %s2544_s17, %s3574_s17  }
  0x12   : > { %3505 = sst [smem:[#allocation18_spill]] %s2466_s20  ;;  %s36_s30 = sadd.s32 1, %s2490_s25 }
  0x13   : > { %3506 = sst [smem:[#allocation19_spill]] %s2470_s21  ;;  %p2611_p0 = scmp.ge.s32.totalorder %s36_s30, 2 }
  0x14   : > { %3507 = sst [smem:[#allocation20_spill]] %s2478_s23  ;;  %p60_p1 = scmp.eq.s32.totalorder %s2502_s28, 0 }
  0x15   : > { %3508 = sst [smem:[#allocation21_spill]] %s2482_s0  ;;  %p66_p2 = scmp.eq.s32.totalorder %s2608_s29, 0 }
  0x16   : > { %3509 = sst [smem:[#allocation22_spill]] %s2486_s24  ;;  %s3591_s30 = smov (%p2611_p0, %s36_s30), 0 }
  0x17   : > { %3510 = sst [smem:[#allocation23_spill]] %s2494_s26  ;;  %p87_p3 = scmp.ne.s32.totalorder %s2462_s19, %s2458_s18 }
  0x18   : > { %3511 = sst [smem:[#allocation24_spill]] %s2608_s29  ;;  %p93_p4 = scmp.ne.s32.totalorder %s2458_s18, %s2454_s17 }
  0x19   : > { %p2628_p5 = por %p87_p3, %p60_p1  ;;  %p2064_p7 = scmp.lt.s32.totalorder %s2502_s28, 8 }
  0x1a   : > { %p2634_p6 = por %p93_p4, %p66_p2  ;;  %s3473_s10 = sshll.u32 %s2498_s27, 5 }
  0x1b   : > { %s196_s11 = sand.u32 1, %s2502_s28   ;;  %s198_s12 = sand.u32 1, %s2462_s19  }
  0x1c   : > { %s3514_s9 = scalar_select %p2634_p6, 1, 0 }
  0x1d   : > { %s1826_s13 = sshll.u32 %s198_s12, 7  ;;  %s1827_s14 = sshll.u32 %s2490_s25, 4 }
  0x1e   : > { %3515 = sst [smem:[#allocation25_spill]] %s3514_s9  ;;  %s206_s15 = sadd.s32 %s1827_s14, %s3473_s10 }
  0x1f   : > { %s1829_s16 = sshll.u32 %s206_s15, 7  ;;  %s200_s17 = scalar_lea.vmem [#allocation10], %s1826_s13 }
  0x20   : > { %s209_s7 = sshll.u32 %s200_s17, 4  ;;  %s3516_s2 = sld [smem:[#allocation38_spill]]  ;;  %s210_s7 = int_to_ptr.vmem [resolvable:$true] %s209_s7 }
  0x21   : > { %p2652_p8 = pnand %p2064_p7, %p2628_p5  ;;  %s3518_s3 = sld [smem:[#allocation39_spill]] }
  0x22   : > { %s223_s15 = scalar_lea.vmem [#allocation12], %s1826_s13  ;;  %s2663_s10 = scalar_lea.sflag [#allocation11], %s196_s11 }
  0x23   : > { %s232_s17 = sshll.u32 %s223_s15, 4  ;;  %p3474_p9 = pneg %p2652_p8  ;;  %s2682_s17 = int_to_ptr.vmem [resolvable:$true] %s232_s17 }
  0x24   : > { %s2291_s4 = scalar_lea.vmem %s210_s7, 2048  ;;  %s2504_s6 = smov [#allocation10]  }
  0x25   : > { %p2292_p10 = scmp.ne.s32.totalorder %s210_s7, %s2291_s4  ;;  %s2296_s8 = sshll.u32 %s2504_s6, 4  ;;  %s2297_s8 = int_to_ptr.vmem [resolvable:$false] %s2296_s8 }
  0x26   : > { %s208_s24 = scalar_lea.hbm %s3516_s2, %s1829_s16  ;;  %s2298_s12 = scalar_lea.vmem %s2297_s8, 4096 }
  0x27   : > { %s2661_s14 = scalar_lea.hbm %s3518_s3, %s1829_s16  ;;  %p2294_p11 = pnand %p2292_p10, %p3474_p9 }
  0x28   : > { %p2299_p13 = scmp.lt.s32.totalorder %s210_s7, %s2297_s8  ;;  %p2300_p3 = scmp.lt.s32.totalorder %s2298_s12, %s2291_s4 }
  0x29   : > { %p2295_p12 = pneg %p2294_p11 }
  0x2a   : > { %p2301_p4 = por %p2300_p3, %p2299_p13 }
  0x2c   : > { %p2302_p5 = pnand %p2301_p4, %p2295_p12 }
  0x2e   : > { %2305 = shalt.err (!%p2302_p5)
}
  0x2f   : > { %s3475_s23 = smov 128   ;;  %s3477_s9 = smov 8  }
  0x30   : > { %2056 = dma.hbm_to_vmem [thread:$0]  (!%p2652_p8), %s208_s24, 2048, %s210_s7, %s2663_s10, %s3475_s23, %s3475_s23, %s3477_s9  }
  0x31   : > { %p1834_p10 = scmp.ge.s32.totalorder %s2502_s28, 1  ;;  %p240_p11 = scmp.lt.s32.totalorder %s2502_s28, 9 }
  0x32   : > { %s1819_s13 = sadd.s32 4294967294, %s2502_s28   ;;  %s39_s16 = sadd.s32 1, %s2494_s26 }
  0x33   : > { %p2678_p12 = pnand %p1834_p10, %p240_p11  ;;  %s3593_s16 = smov (!%p2611_p0, %s39_s16), %s2494_s26 }
  0x34   : > { %p59_p13 = scmp.ne.s32.totalorder %s2474_s22, %s2470_s21  ;;  %p65_p3 = scmp.ne.s32.totalorder %s2470_s21, %s2466_s20 }
  0x35   : > { %s3519_s11 = scalar_select %p2678_p12, 1, 0 }
  0x36   : > { %p41_p4 = scmp.ge.s32.totalorder %s3593_s16, 2  ;;  %p147_p5 = scmp.eq.s32.totalorder %s2608_s29, 7 }
  0x37   : > { %3520 = sst [smem:[#allocation26_spill]] %s3519_s11  ;;  %s52_s24 = sadd.s32 1, %s2474_s22 }
  0x38   : > { %p2700_p10 = por %p66_p2, %p65_p3  ;;  %s3595_s16 = smov (%p41_p4, %s3593_s16), 0 }
  0x39   : > { %3523 = sst [smem:[#allocation28_spill]] %s3595_s16  ;;  %s3524_s5 = sadd.s32 1, %s2498_s27 }
  0x3a   : > { %s3521_s7 = scalar_select %p2700_p10, 1, 0 }
  0x3b   : > { %s3597_s5 = smov (!%p41_p4, %s3524_s5), %s2498_s27  ;;  %p2711_p0 = por %p60_p1, %p59_p13 }
  0x3c   : > { %3522 = sst [smem:[#allocation27_spill]] %s3521_s7  ;;  %p2715_p11 = por %p147_p5, %p59_p13 }
  0x3d   : > { %p45_p2 = scmp.ge.s32.totalorder %s3597_s5, 2  ;;  %p153_p9 = scmp.eq.s32.totalorder %s1819_s13, 7 }
  0x3e   : > { %s3526_s15 = scalar_select %p2715_p11, 1, 0 }
  0x3f   : > { %s48_s4 = ssub.s32 %s2494_s26, %s3595_s16  ;;  %s3492_s6 = sand.u32 1, %s2474_s22  }
  0x40   : > { %3527 = sst [smem:[#allocation29_spill]] %s3526_s15  ;;  %s3599_s5 = smov (%p45_p2, %s3597_s5), 0 }
  0x41   : > { %3528 = sst [smem:[#allocation30_spill]] %s3599_s5  ;;  %p2727_p4 = por %p153_p9, %p65_p3 }
  0x42   : > { %s1823_s23 = sshll.u32 %s2494_s26, 4  ;;  %s47_s9 = ssub.s32 %s2498_s27, %s3599_s5 }
  0x43   : > { %s3529_s8 = scalar_select %p2727_p4, 1, 0 }
  0x44   : > { %s1822_s2 = sshll.u32 %s3492_s6, 7  ;;  %s49_s13 = sor.u32 %s48_s4, %s47_s9 }
  0x45   : > { %3530 = sst [smem:[#allocation31_spill]] %s3529_s8  ;;  %s3531_s3 = ssub.s32 %s2490_s25, %s3591_s30 }
  0x46   : > { %s77_s16 = sor.u32 %s3531_s3, %s47_s9  ;;  %p50_p1 = scmp.eq.s32.totalorder %s49_s13, 0 }
  0x47   : > { %p78_p13 = scmp.eq.s32.totalorder %s77_s16, 0  ;;  %s3532_s20 = sshll.u32 %s2498_s27, 5 }
  0x48   : > { %s183_s15 = sadd.s32 %s3532_s20, %s1823_s23  ;;  %s3533_s29 = sadd.s32 1, %s2462_s19 }
  0x49   : > { %s2742_s18 = scalar_select %p50_p1, %s2474_s22, %s52_s24  }
  0x4a   : > { %s2747_s8 = scalar_select %p78_p13, %s2462_s19, %s3533_s29  }
  0x4b   : > { %s1825_s26 = sshll.u32 %s183_s15, 7  ;;  %s177_s7 = scalar_lea.vmem [#allocation7], %s1822_s2 }
  0x4c   : > { %s186_s5 = sshll.u32 %s177_s7, 4  ;;  %s2752_s6 = scalar_lea.hbm %s3465_s1, %s1825_s26  ;;  %s2754_s5 = int_to_ptr.vmem [resolvable:$true] %s186_s5 }
  0x4d   : > { %p2760_p9 = pnand %p2064_p7, %p2711_p0  ;;  %s2319_s20 = scalar_lea.vmem %s2682_s17, 2048 }
  0x4e   : > { %p2320_p3 = scmp.ne.s32.totalorder %s2682_s17, %s2319_s20  ;;  %p3535_p5 = pneg %p2652_p8 }
  0x4f   : > { %s2507_s2 = smov [#allocation12]  }
  0x50   : > { %p2322_p2 = pnand %p2320_p3, %p3535_p5  ;;  %s2324_s29 = sshll.u32 %s2507_s2, 4  ;;  %s2325_s29 = int_to_ptr.vmem [resolvable:$false] %s2324_s29 }
  0x51   : > { %s2326_s21 = scalar_lea.vmem %s2325_s29, 4096  ;;  %p2327_p13 = scmp.lt.s32.totalorder %s2682_s17, %s2325_s29 }
  0x52   : > { %p2323_p1 = pneg %p2322_p2  ;;  %p2328_p4 = scmp.lt.s32.totalorder %s2326_s21, %s2319_s20 }
  0x54   : > { %p2329_p11 = por %p2328_p4, %p2327_p13 }
  0x56   : > { %p2330_p6 = pnand %p2329_p11, %p2323_p1 }
  0x58   : > { %2333 = shalt.err (!%p2330_p6)
}
  0x59   : > { %s3536_s26 = smov 8   ;;  %s3537_s23 = smov 128  }
  0x5a   : > { %2059 = dma.hbm_to_vmem [thread:$0]  (!%p2652_p8), %s2661_s14, 2048, %s2682_s17, %s2663_s10, %s3537_s23, %s3537_s23, %s3536_s26  }
  0x5b   : > { %s3538_s9 = sand.u32 1, %s2474_s22   ;;  %p2336_p7 = pneg %p2760_p9 }
  0x5c   : > { %s174_s11 = scalar_lea.sflag [#allocation8], %s3538_s9  ;;  %s2347_s16 = scalar_lea.vmem %s2754_s5, 2048 }
  0x5d   : > { %p2348_p6 = scmp.ne.s32.totalorder %s2754_s5, %s2347_s16  ;;  %s2508_s0 = smov [#allocation7]  }
  0x5e   : > { %s2352_s24 = sshll.u32 %s2508_s0, 4  ;;  %s2353_s24 = int_to_ptr.vmem [resolvable:$false] %s2352_s24 }
  0x5f   : > { %p2350_p0 = pnand %p2348_p6, %p2336_p7  ;;  %s2354_s7 = scalar_lea.vmem %s2353_s24, 4096 }
  0x60   : > { %p2355_p4 = scmp.lt.s32.totalorder %s2754_s5, %s2353_s24  ;;  %p2356_p3 = scmp.lt.s32.totalorder %s2354_s7, %s2347_s16 }
  0x61   : > { %p2351_p11 = pneg %p2350_p0 }
  0x62   : > { %p2357_p5 = por %p2356_p3, %p2355_p4 }
  0x64   : > { %p2358_p2 = pnand %p2357_p5, %p2351_p11 }
  0x66   : > { %2361 = shalt.err (!%p2358_p2)
}
  0x67   : > { %2053 = dma.hbm_to_vmem [thread:$0]  (!%p2760_p9), %s2752_s6, 2048, %s2754_s5, %s174_s11, %s3537_s23, %s3537_s23, %s3536_s26  }
  0x68   : > { %244 = sbr.rel (%p2678_p12) target bundleno = 1157 (0x485), region = 32 }
  0x6d   : > { %s3540_s14 = sld [smem:[#allocation19_spill]] }
  0x73   : > { %s2795_s12 = sand.u32 1, %s3540_s14  }
  0x74   : > { %s1835_s15 = sshll.u32 %s2795_s12, 7  ;;  %s247_s4 = scalar_lea.sflag [#allocation8], %s2795_s12 }
  0x75   : > { %s2799_s13 = scalar_lea.vmem [#allocation7], %s1835_s15 }
  0x76   : > { %2441 = dma.done.wait (%p2700_p10), %s247_s4, 2048  }
  0x77   : > { %2443 = vsyncadd (%p2700_p10), %s247_s4, 4294965248  ;;  %s3542_s3 = sld [smem:[#allocation24_spill]] }
  0x78   : > { %s3543_s5 = sld [smem:[#allocation17_spill]] }
  0x79   : > { %s3544_s6 = sld [smem:[#allocation25_spill]] }
  0x7d   : > { %s255_s20 = sand.u32 1, %s3542_s3  }
  0x7e   : > { %s257_s2 = sand.u32 1, %s3543_s5   ;;  %s256_s21 = scalar_lea.sflag [#allocation11], %s255_s20 }
  0x7f   : > { %s1836_s29 = sshll.u32 %s257_s2, 7  ;;  %p3545_p8 = scmp.ne.s32.totalorder %s3544_s6, 0 }
  0x80   : > { %s2807_s26 = scalar_lea.vmem [#allocation10], %s1836_s29 }
  0x81   : > { %2445 = dma.done.wait (%p3545_p8), %s256_s21, 4096  }
  0x82   : > { %2447 = vsyncadd (%p3545_p8), %s256_s21, 4294963200  ;;  %s2813_s23 = scalar_lea.vmem [#allocation12], %s1836_s29  ;;  %s2815_s9 = scalar_lea.vmem [#allocation13], %s1835_s15 }
  0x83   : > { %s3546_s11 = sld [smem:[#allocation20_spill]] }
  0x89   : > { %p1839_p12 = scmp.ne.s32.totalorder %s3546_s11, 0 }
  0x8b   : > { %308 = sbr.rel (%p1839_p12) target bundleno = 169 (0xa9), region = 48 }
  0x90   : > { %vm309_vm0 = vcmask 7168   ;;  %v2509_v0 = vmov -inf   ;;  %v2510_v1 = vmov 0.0  }
  0x91   : > { %310 = vst.msk [vmem:[#allocation2] sm:$0xff] %vm309_vm0, %v2509_v0  ;;  %311 = vst.msk [vmem:[#allocation2 + $0x8] sm:$0xff] %vm309_vm0, %v2509_v0 }
  0x92   : > { %312 = vst.msk [vmem:[#allocation2 + $0x10] sm:$0xff] %vm309_vm0, %v2509_v0  ;;  %313 = vst.msk [vmem:[#allocation2 + $0x18] sm:$0xff] %vm309_vm0, %v2509_v0 }
  0x93   : > { %314 = vst.msk [vmem:[#allocation2 + $0x20] sm:$0xff] %vm309_vm0, %v2509_v0  ;;  %315 = vst.msk [vmem:[#allocation2 + $0x28] sm:$0xff] %vm309_vm0, %v2509_v0 }
  0x94   : > { %316 = vst.msk [vmem:[#allocation2 + $0x30] sm:$0xff] %vm309_vm0, %v2509_v0  ;;  %317 = vst.msk [vmem:[#allocation2 + $0x38] sm:$0xff] %vm309_vm0, %v2509_v0 }
  0x95   : > { %318 = vst.msk [vmem:[#allocation2 + $0x40] sm:$0xff] %vm309_vm0, %v2509_v0  ;;  %319 = vst.msk [vmem:[#allocation2 + $0x48] sm:$0xff] %vm309_vm0, %v2509_v0 }
  0x96   : > { %320 = vst.msk [vmem:[#allocation2 + $0x50] sm:$0xff] %vm309_vm0, %v2509_v0  ;;  %321 = vst.msk [vmem:[#allocation2 + $0x58] sm:$0xff] %vm309_vm0, %v2509_v0 }
  0x97   : > { %322 = vst.msk [vmem:[#allocation2 + $0x60] sm:$0xff] %vm309_vm0, %v2509_v0  ;;  %323 = vst.msk [vmem:[#allocation2 + $0x68] sm:$0xff] %vm309_vm0, %v2509_v0 }
  0x98   : > { %324 = vst.msk [vmem:[#allocation2 + $0x70] sm:$0xff] %vm309_vm0, %v2509_v0  ;;  %325 = vst.msk [vmem:[#allocation2 + $0x78] sm:$0xff] %vm309_vm0, %v2509_v0 }
  0x99   : > { %326 = vst.msk [vmem:[#allocation3] sm:$0xff] %vm309_vm0, %v2510_v1  ;;  %327 = vst.msk [vmem:[#allocation3 + $0x8] sm:$0xff] %vm309_vm0, %v2510_v1 }
  0x9a   : > { %328 = vst.msk [vmem:[#allocation3 + $0x10] sm:$0xff] %vm309_vm0, %v2510_v1  ;;  %329 = vst.msk [vmem:[#allocation3 + $0x18] sm:$0xff] %vm309_vm0, %v2510_v1 }
  0x9b   : > { %330 = vst.msk [vmem:[#allocation3 + $0x20] sm:$0xff] %vm309_vm0, %v2510_v1  ;;  %331 = vst.msk [vmem:[#allocation3 + $0x28] sm:$0xff] %vm309_vm0, %v2510_v1 }
  0x9c   : > { %332 = vst.msk [vmem:[#allocation3 + $0x30] sm:$0xff] %vm309_vm0, %v2510_v1  ;;  %333 = vst.msk [vmem:[#allocation3 + $0x38] sm:$0xff] %vm309_vm0, %v2510_v1 }
  0x9d   : > { %334 = vst.msk [vmem:[#allocation3 + $0x40] sm:$0xff] %vm309_vm0, %v2510_v1  ;;  %335 = vst.msk [vmem:[#allocation3 + $0x48] sm:$0xff] %vm309_vm0, %v2510_v1 }
  0x9e   : > { %336 = vst.msk [vmem:[#allocation3 + $0x50] sm:$0xff] %vm309_vm0, %v2510_v1  ;;  %337 = vst.msk [vmem:[#allocation3 + $0x58] sm:$0xff] %vm309_vm0, %v2510_v1 }
  0x9f   : > { %338 = vst.msk [vmem:[#allocation3 + $0x60] sm:$0xff] %vm309_vm0, %v2510_v1  ;;  %339 = vst.msk [vmem:[#allocation3 + $0x68] sm:$0xff] %vm309_vm0, %v2510_v1 }
  0xa0   : > { %340 = vst.msk [vmem:[#allocation3 + $0x70] sm:$0xff] %vm309_vm0, %v2510_v1  ;;  %341 = vst.msk [vmem:[#allocation3 + $0x78] sm:$0xff] %vm309_vm0, %v2510_v1 }
  0xa1   : > { %342 = vst [vmem:[#allocation4 + $0x30] sm:$0xff] %v2510_v1  ;;  %343 = vst [vmem:[#allocation4] sm:$0xff] %v2510_v1 }
  0xa2   : > { %344 = vst [vmem:[#allocation4 + $0x58] sm:$0xff] %v2510_v1  ;;  %345 = vst [vmem:[#allocation4 + $0x18] sm:$0xff] %v2510_v1 }
  0xa3   : > { %346 = vst [vmem:[#allocation4 + $0x50] sm:$0xff] %v2510_v1  ;;  %347 = vst [vmem:[#allocation4 + $0x68] sm:$0xff] %v2510_v1 }
  0xa4   : > { %348 = vst [vmem:[#allocation4 + $0x8] sm:$0xff] %v2510_v1  ;;  %349 = vst [vmem:[#allocation4 + $0x48] sm:$0xff] %v2510_v1 }
  0xa5   : > { %350 = vst [vmem:[#allocation4 + $0x40] sm:$0xff] %v2510_v1  ;;  %351 = vst [vmem:[#allocation4 + $0x20] sm:$0xff] %v2510_v1 }
  0xa6   : > { %352 = vst [vmem:[#allocation4 + $0x10] sm:$0xff] %v2510_v1  ;;  %353 = vst [vmem:[#allocation4 + $0x38] sm:$0xff] %v2510_v1 }
  0xa7   : > { %354 = vst [vmem:[#allocation4 + $0x60] sm:$0xff] %v2510_v1  ;;  %355 = vst [vmem:[#allocation4 + $0x70] sm:$0xff] %v2510_v1 }
  0xa8   : > { %356 = vst [vmem:[#allocation4 + $0x78] sm:$0xff] %v2510_v1  ;;  %357 = vst [vmem:[#allocation4 + $0x28] sm:$0xff] %v2510_v1 }
  0xa9 PF: > { %v389_v2 = vld [vmem:[%s2807_s26 + $0x78] sm:$0xff]  ;;  %v388_v3 = vld [vmem:[%s2807_s26 + $0x70] sm:$0xff]  ;;  %v387_v4 = vld [vmem:[%s2807_s26 + $0x68] sm:$0xff]  ;;  %v2511_v42 = vmov 0   ;;  %vm871_vm1 = vcmask 7168   ;;  %s3549_s16 = sld [smem:[#allocation21_spill]] }
  0xaa   : > { %1930 = vmatprep.subr.mxu0 %v389_v2  ;;  %v358_v5 = vld [vmem:[%s2799_s13] sm:$0xff]  ;;  %v385_v7 = vld [vmem:[%s2807_s26 + $0x58] sm:$0xff]  ;;  %v384_v8 = vld [vmem:[%s2807_s26 + $0x50] sm:$0xff]  ;;  %2178 = vset.pattern.permute.xlu0 %v2511_v42  ;;  %s3551_s0 = sld [smem:[#allocation22_spill]] }
  0xab   : > { %1931 = vmatpush3.xpose.msra.mxu0 %v389_v2  ;;  %1962 = vmatprep.mubr.f32.mxu0 %v358_v5  ;;  %v386_v6 = vld [vmem:[%s2807_s26 + $0x60] sm:$0xff]  ;;  %v383_v9 = vld [vmem:[%s2807_s26 + $0x48] sm:$0xff]  ;;  %v381_v11 = vld [vmem:[%s2807_s26 + $0x38] sm:$0xff]  ;;  %s3552_s24 = sld [smem:[#allocation20_spill]] }
  0xac   : > { %1932 = vmatprep.subr.mxu0 %v388_v3  ;;  %v382_v10 = vld [vmem:[%s2807_s26 + $0x40] sm:$0xff]  ;;  %v380_v12 = vld [vmem:[%s2807_s26 + $0x30] sm:$0xff]  ;;  %v379_v13 = vld [vmem:[%s2807_s26 + $0x28] sm:$0xff]  ;;  %2179 = vset.pattern.permute.xlu1 %v2511_v42  ;;  %s994_s17 = sld [smem:[#allocation6]] }
  0xad   : > { %v378_v14 = vld [vmem:[%s2807_s26 + $0x20] sm:$0xff]  ;;  %v377_v15 = vld [vmem:[%s2807_s26 + $0x18] sm:$0xff]  ;;  %v376_v16 = vld [vmem:[%s2807_s26 + $0x10] sm:$0xff] }
  0xae   : > { %v375_v17 = vld [vmem:[%s2807_s26 + $0x8] sm:$0xff]  ;;  %v374_v18 = vld [vmem:[%s2807_s26] sm:$0xff]  ;;  %v360_v20 = vld [vmem:[%s2799_s13 + $0x10] sm:$0xff] }
  0xaf   : > { %1933 = vmatpush3.xpose.msra.mxu0 %v388_v3  ;;  %v359_v19 = vld [vmem:[%s2799_s13 + $0x8] sm:$0xff]  ;;  %v361_v21 = vld [vmem:[%s2799_s13 + $0x18] sm:$0xff]  ;;  %v362_v22 = vld [vmem:[%s2799_s13 + $0x20] sm:$0xff]  ;;  %s1840_s7 = sshll.u32 %s3549_s16, 7 }
  0xb0   : > { %1934 = vmatprep.subr.mxu0 %v387_v4  ;;  %v363_v23 = vld [vmem:[%s2799_s13 + $0x28] sm:$0xff]  ;;  %v364_v24 = vld [vmem:[%s2799_s13 + $0x30] sm:$0xff]  ;;  %v365_v25 = vld [vmem:[%s2799_s13 + $0x38] sm:$0xff]  ;;  %s1842_s10 = sshll.u32 %s3551_s0, 8 }
  0xb1   : > { %v366_v26 = vld [vmem:[%s2799_s13 + $0x40] sm:$0xff]  ;;  %v367_v27 = vld [vmem:[%s2799_s13 + $0x48] sm:$0xff]  ;;  %v368_v28 = vld [vmem:[%s2799_s13 + $0x50] sm:$0xff]  ;;  %s1841_s14 = sshll.u32 %s3552_s24, 7  ;;  %p1859_p10 = scmp.ne.s32.totalorder %s3552_s24, 1 }
  0xb2   : > { %v369_v29 = vld [vmem:[%s2799_s13 + $0x58] sm:$0xff]  ;;  %v370_v30 = vld [vmem:[%s2799_s13 + $0x60] sm:$0xff]  ;;  %v371_v31 = vld [vmem:[%s2799_s13 + $0x68] sm:$0xff] }
  0xb3   : > { %1935 = vmatpush3.xpose.msra.mxu0 %v387_v4  ;;  %v372_v32 = vld [vmem:[%s2799_s13 + $0x70] sm:$0xff]  ;;  %v373_v33 = vld [vmem:[%s2799_s13 + $0x78] sm:$0xff]  ;;  %v403_v53 = vld [vmem:[%s2813_s23 + $0x68] sm:$0xff] }
  0xb4   : > { %1936 = vmatprep.subr.mxu0 %v386_v6  ;;  %v405_v51 = vld [vmem:[%s2813_s23 + $0x78] sm:$0xff]  ;;  %v404_v52 = vld [vmem:[%s2813_s23 + $0x70] sm:$0xff]  ;;  %v402_v54 = vld [vmem:[%s2813_s23 + $0x60] sm:$0xff] }
  0xb5   : > { %1986 = vmatprep.subr.mxu1 %v405_v51  ;;  %v401_v55 = vld [vmem:[%s2813_s23 + $0x58] sm:$0xff]  ;;  %v2935_v56 = vld [vmem:[#allocation2] sm:$0xff]  ;;  %v400_v57 = vld [vmem:[%s2813_s23 + $0x50] sm:$0xff] }
  0xb6   : > { %1987 = vmatpush3.msra.mxu1 %v405_v51  ;;  %v2938_v59 = vld [vmem:[#allocation2 + $0x18] sm:$0xff]  ;;  %v399_v60 = vld [vmem:[%s2813_s23 + $0x48] sm:$0xff]  ;;  %v398_v0 = vld [vmem:[%s2813_s23 + $0x40] sm:$0xff] }
  0xb7   : > { %1937 = vmatpush3.xpose.msra.mxu0 %v386_v6  ;;  %1988 = vmatprep.subr.mxu1 %v404_v52  ;;  %v2944_v63 = vld [vmem:[#allocation2 + $0x8] sm:$0xff]  ;;  %v2953_v3 = vld [vmem:[#allocation2 + $0x10] sm:$0xff]  ;;  %v397_v4 = vld [vmem:[%s2813_s23 + $0x38] sm:$0xff] }
  0xb8   : > { %1938 = vmatprep.subr.mxu0 %v385_v7  ;;  %1989 = vmatpush3.msra.mxu1 %v404_v52 }
  0xb9   : > { %1990 = vmatprep.subr.mxu1 %v403_v53 }
  0xba   : > { %1991 = vmatpush3.msra.mxu1 %v403_v53  ;;  %v562_v53 = vld [vmem:[#allocation2 + $0x58] sm:$0xff] }
  0xbb   : > { %1939 = vmatpush3.xpose.msra.mxu0 %v385_v7  ;;  %1992 = vmatprep.subr.mxu1 %v402_v54  ;;  %v2961_v7 = vld [vmem:[#allocation2 + $0x20] sm:$0xff] }
  0xbc   : > { %1940 = vmatprep.subr.mxu0 %v384_v8  ;;  %1993 = vmatpush3.msra.mxu1 %v402_v54 }
  0xbd   : > { %1994 = vmatprep.subr.mxu1 %v401_v55 }
  0xbe   : > { %1995 = vmatpush3.msra.mxu1 %v401_v55 }
  0xbf   : > { %1941 = vmatpush3.xpose.msra.mxu0 %v384_v8  ;;  %1996 = vmatprep.subr.mxu1 %v400_v57  ;;  %v396_v8 = vld [vmem:[%s2813_s23 + $0x30] sm:$0xff] }
  0xc0   : > { %1942 = vmatprep.subr.mxu0 %v383_v9  ;;  %1997 = vmatpush3.msra.mxu1 %v400_v57 }
  0xc1   : > { %1998 = vmatprep.subr.mxu1 %v399_v60 }
  0xc2   : > { %1999 = vmatpush3.msra.mxu1 %v399_v60 }
  0xc3   : > { %1943 = vmatpush3.xpose.msra.mxu0 %v383_v9  ;;  %2000 = vmatprep.subr.mxu1 %v398_v0 }
  0xc4   : > { %1944 = vmatprep.subr.mxu0 %v382_v10  ;;  %2001 = vmatpush3.msra.mxu1 %v398_v0 }
  0xc5   : > { %2002 = vmatprep.subr.mxu1 %v397_v4 }
  0xc6   : > { %2003 = vmatpush3.msra.mxu1 %v397_v4  ;;  %v3030_v4 = vld [vmem:[#allocation2 + $0x70] sm:$0xff] }
  0xc7   : > { %1945 = vmatpush3.xpose.msra.mxu0 %v382_v10  ;;  %2004 = vmatprep.subr.mxu1 %v396_v8  ;;  %v2970_v10 = vld [vmem:[#allocation2 + $0x28] sm:$0xff] }
  0xc8   : > { %1946 = vmatprep.subr.mxu0 %v381_v11  ;;  %2005 = vmatpush3.msra.mxu1 %v396_v8 }
  0xcb   : > { %1947 = vmatpush3.xpose.msra.mxu0 %v381_v11 }
  0xcc   : > { %1948 = vmatprep.subr.mxu0 %v380_v12 }
  0xcf   : > { %1949 = vmatpush3.xpose.msra.mxu0 %v380_v12  ;;  %v395_v12 = vld [vmem:[%s2813_s23 + $0x28] sm:$0xff] }
  0xd0   : > { %1950 = vmatprep.subr.mxu0 %v379_v13  ;;  %2006 = vmatprep.subr.mxu1 %v395_v12 }
  0xd1   : > { %2007 = vmatpush3.msra.mxu1 %v395_v12 }
  0xd3   : > { %1951 = vmatpush3.xpose.msra.mxu0 %v379_v13 }
  0xd4   : > { %1952 = vmatprep.subr.mxu0 %v378_v14 }
  0xd7   : > { %1953 = vmatpush3.xpose.msra.mxu0 %v378_v14 }
  0xd8   : > { %1954 = vmatprep.subr.mxu0 %v377_v15 }
  0xdb   : > { %1955 = vmatpush3.xpose.msra.mxu0 %v377_v15  ;;  %v2978_v15 = vld [vmem:[#allocation2 + $0x30] sm:$0xff] }
  0xdc   : > { %1956 = vmatprep.subr.mxu0 %v376_v16 }
  0xdf   : > { %1957 = vmatpush3.xpose.msra.mxu0 %v376_v16  ;;  %v394_v16 = vld [vmem:[%s2813_s23 + $0x20] sm:$0xff] }
  0xe0   : > { %1958 = vmatprep.subr.mxu0 %v375_v17  ;;  %2008 = vmatprep.subr.mxu1 %v394_v16 }
  0xe1   : > { %2009 = vmatpush3.msra.mxu1 %v394_v16 }
  0xe3   : > { %1959 = vmatpush3.xpose.msra.mxu0 %v375_v17 }
  0xe4   : > { %1960 = vmatprep.subr.mxu0 %v374_v18 }
  0xe7   : > { %1961 = vmatpush3.xpose.msra.mxu0 %v374_v18  ;;  %v2985_v18 = vld [vmem:[#allocation2 + $0x38] sm:$0xff] }
  0xea   : > { %1963 = vmatmul.mubr.f32.vlgmr.msra.gmra.mxu0 %v359_v19 }
  0xeb   : > { %1965 = vmatprep.mubr.f32.mxu0 %v360_v20  ;;  %v393_v20 = vld [vmem:[%s2813_s23 + $0x18] sm:$0xff] }
  0xec   : > { %2010 = vmatprep.subr.mxu1 %v393_v20 }
  0xed   : > { %2011 = vmatpush3.msra.mxu1 %v393_v20 }
  0xee   : > { %1966 = vmatmul.mubr.f32.gmra.mxu0 %v361_v21 }
  0xef   : > { %1968 = vmatprep.mubr.f32.mxu0 %v362_v22 }
  0xf2   : > { %1969 = vmatmul.mubr.f32.gmra.mxu0 %v363_v23  ;;  %v2992_v23 = vld [vmem:[#allocation2 + $0x40] sm:$0xff] }
  0xf3   : > { %1971 = vmatprep.mubr.f32.mxu0 %v364_v24  ;;  %v392_v24 = vld [vmem:[%s2813_s23 + $0x10] sm:$0xff] }
  0xf4   : > { %2012 = vmatprep.subr.mxu1 %v392_v24 }
  0xf5   : > { %2013 = vmatpush3.msra.mxu1 %v392_v24 }
  0xf6   : > { %1972 = vmatmul.mubr.f32.gmra.mxu0 %v365_v25 }
  0xf7   : > { %1974 = vmatprep.mubr.f32.mxu0 %v366_v26 }
  0xfa   : > { %1975 = vmatmul.mubr.f32.gmra.mxu0 %v367_v27  ;;  %v3001_v27 = vld [vmem:[#allocation2 + $0x48] sm:$0xff] }
  0xfb   : > { %1977 = vmatprep.mubr.f32.mxu0 %v368_v28 }
  0xfe   : > { %1978 = vmatmul.mubr.f32.gmra.mxu0 %v369_v29  ;;  %v391_v29 = vld [vmem:[%s2813_s23 + $0x8] sm:$0xff] }
  0xff   : > { %1980 = vmatprep.mubr.f32.mxu0 %v370_v30  ;;  %2014 = vmatprep.subr.mxu1 %v391_v29 }
 0x100   : > { %2015 = vmatpush3.msra.mxu1 %v391_v29 }
 0x102   : > { %1981 = vmatmul.mubr.f32.gmra.mxu0 %v371_v31 }
 0x103   : > { %1983 = vmatprep.mubr.f32.mxu0 %v372_v32  ;;  %v3008_v32 = vld [vmem:[#allocation2 + $0x50] sm:$0xff] }
 0x106   : > { %1984 = vmatmul.mubr.f32.gmra.mxu0 %v373_v33  ;;  %v390_v33 = vld [vmem:[%s2813_s23] sm:$0xff] }
 0x107   : > { %2016 = vmatprep.subr.mxu1 %v390_v33 }
 0x108   : > { %2017 = vmatpush3.msra.mxu1 %v390_v33 }
 0x1aa   : > { %v2882_v34 = vpop.f32.mrf.mxu0 }
 0x1ac   : > { %v2884_v35 = vpop.f32.mrf.mxu0 }
 0x1ad   : > { %567 = vmax.xlane.f32.xlu0 %v2884_v35 }
 0x1ae   : > { %v2887_v36 = vpop.f32.mrf.mxu0 }
 0x1af   : > { %573 = vmax.xlane.f32.xlu1 %v2887_v36 }
 0x1b0   : > { %v2890_v37 = vpop.f32.mrf.mxu0 }
 0x1b1   : > { %569 = vmax.xlane.f32.xlu0 %v2882_v34 }
 0x1b2   : > { %v2893_v38 = vpop.f32.mrf.mxu0 }
 0x1b3   : > { %571 = vmax.xlane.f32.xlu1 %v2890_v37 }
 0x1b4   : > { %v2896_v39 = vpop.f32.mrf.mxu0 }
 0x1b5   : > { %575 = vmax.xlane.f32.xlu0 %v2896_v39 }
 0x1b6   : > { %v2899_v40 = vpop.f32.mrf.mxu0 }
 0x1b7   : > { %577 = vmax.xlane.f32.xlu1 %v2893_v38 }
 0x1b8   : > { %v2902_v41 = vpop.f32.mrf.mxu0 }
 0x1b9   : > { %579 = vmax.xlane.f32.xlu0 %v2902_v41 }
 0x1ba   : > { %v2905_v43 = vpop.f32.mrf.mxu0 }
 0x1bb   : > { %581 = vmax.xlane.f32.xlu1 %v2899_v40 }
 0x1bc   : > { %v2908_v44 = vpop.f32.mrf.mxu0 }
 0x1bd   : > { %583 = vmax.xlane.f32.xlu0 %v2908_v44 }
 0x1be   : > { %v2911_v45 = vpop.f32.mrf.mxu0 }
 0x1bf   : > { %585 = vmax.xlane.f32.xlu1 %v2905_v43 }
 0x1c0   : > { %v2914_v46 = vpop.f32.mrf.mxu0 }
 0x1c1   : > { %587 = vmax.xlane.f32.xlu0 %v2914_v46 }
 0x1c2   : > { %v2917_v47 = vpop.f32.mrf.mxu0 }
 0x1c3   : > { %589 = vmax.xlane.f32.xlu1 %v2911_v45 }
 0x1c4   : > { %v2920_v48 = vpop.f32.mrf.mxu0 }
 0x1c5   : > { %591 = vmax.xlane.f32.xlu0 %v2920_v48 }
 0x1c6   : > { %v2923_v49 = vpop.f32.mrf.mxu0 }
 0x1c7   : > { %593 = vmax.xlane.f32.xlu1 %v2917_v47 }
 0x1c8   : > { %v2926_v50 = vpop.f32.mrf.mxu0 }
 0x1c9   : > { %595 = vmax.xlane.f32.xlu0 %v2926_v50 }
 0x1cb   : > { %597 = vmax.xlane.f32.xlu1 %v2923_v49 }
 0x236   : > { %v568_v58 = vpop.xlane.xlu0 %567 }
 0x237   : > { %v2942_v61 = vmax.f32 %v2935_v56, %v568_v58  ;;  %v3021_v58 = vld [vmem:[#allocation2 + $0x60] sm:$0xff] }
 0x238   : > { %v574_v62 = vpop.xlane.xlu1 %573 }
 0x239   : > { %888 = vst.msk [vmem:[#allocation2] sm:$0xff] %vm871_vm1, %v2942_v61  ;;  %v2950_v1 = vmax.f32 %v2938_v59, %v574_v62  ;;  %665 = vperm.xlu0 %2178, %v2942_v61   ;;  %v615_v25 = vsub.f32 %v2935_v56, %v2942_v61  ;;  %v564_v61 = vld [vmem:[#allocation2 + $0x68] sm:$0xff] }
 0x23a   : > { %v570_v2 = vpop.xlane.xlu0 %569 }
 0x23b   : > { %891 = vst.msk [vmem:[#allocation2 + $0x18] sm:$0xff] %vm871_vm1, %v2950_v1  ;;  %v2959_v5 = vmax.f32 %v2944_v63, %v570_v2  ;;  %v631_v42 = vmul.f32 1.442695, %v615_v25  ;;  %v618_v51 = vsub.f32 %v2938_v59, %v2950_v1 }
 0x23c   : > { %v572_v6 = vpop.xlane.xlu1 %571 }
 0x23d   : > { %889 = vst.msk [vmem:[#allocation2 + $0x8] sm:$0xff] %vm871_vm1, %v2959_v5  ;;  %v2967_v9 = vmax.f32 %v2953_v3, %v572_v6  ;;  %670 = vperm.xlu1 %2179, %v2959_v5   ;;  %2180 = vpow2.f32 %v631_v42  ;;  %v637_v59 = vmul.f32 1.442695, %v618_v51  ;;  %v616_v12 = vsub.f32 %v2944_v63, %v2959_v5 }
 0x23e   : > { %v576_v11 = vpop.xlane.xlu0 %575 }
 0x23f   : > { %890 = vst.msk [vmem:[#allocation2 + $0x10] sm:$0xff] %vm871_vm1, %v2967_v9  ;;  %v2976_v13 = vmax.f32 %v2961_v7, %v576_v11  ;;  %2182 = vpow2.f32 %v637_v59  ;;  %v633_v63 = vmul.f32 1.442695, %v616_v12  ;;  %v617_v5 = vsub.f32 %v2953_v3, %v2967_v9 }
 0x240   : > { %v578_v14 = vpop.xlane.xlu1 %577 }
 0x241   : > { %v604_v17 = vmax.f32 %v2970_v10, %v578_v14  ;;  %680 = vperm.xlu1 %2179, %v2950_v1   ;;  %892 = vst.msk [vmem:[#allocation2 + $0x20] sm:$0xff] %vm871_vm1, %v2976_v13  ;;  %v619_v3 = vsub.f32 %v2961_v7, %v2976_v13 }
 0x242   : > { %v580_v19 = vpop.xlane.xlu0 %579 }
 0x243   : > { %893 = vst.msk [vmem:[#allocation2 + $0x28] sm:$0xff] %vm871_vm1, %v604_v17  ;;  %v2990_v21 = vmax.f32 %v2978_v15, %v580_v19  ;;  %v620_v56 = vsub.f32 %v2970_v10, %v604_v17  ;;  %v3035_v10 = vld [vmem:[#allocation2 + $0x78] sm:$0xff] }
 0x244   : > { %v582_v22 = vpop.xlane.xlu1 %581 }
 0x245   : > { %v606_v26 = vmax.f32 %v2985_v18, %v582_v22  ;;  %675 = vperm.xlu1 %2179, %v2967_v9   ;;  %894 = vst.msk [vmem:[#allocation2 + $0x30] sm:$0xff] %vm871_vm1, %v2990_v21  ;;  %v641_v1 = vmul.f32 1.442695, %v620_v56  ;;  %v621_v33 = vsub.f32 %v2978_v15, %v2990_v21 }
 0x246   : > { %v584_v28 = vpop.xlane.xlu0 %583 }
 0x247   : > { %895 = vst.msk [vmem:[#allocation2 + $0x38] sm:$0xff] %vm871_vm1, %v606_v26  ;;  %v3006_v30 = vmax.f32 %v2992_v23, %v584_v28  ;;  %v622_v6 = vsub.f32 %v2985_v18, %v606_v26  ;;  %2184 = vpow2.f32 %v641_v1 }
 0x248   : > { %v586_v31 = vpop.xlane.xlu1 %585 }
 0x249   : > { %v608_v52 = vmax.f32 %v3001_v27, %v586_v31  ;;  %690 = vperm.xlu1 %2179, %v604_v17   ;;  %896 = vst.msk [vmem:[#allocation2 + $0x40] sm:$0xff] %vm871_vm1, %v3006_v30  ;;  %v645_v17 = vmul.f32 1.442695, %v622_v6  ;;  %v639_v31 = vmul.f32 1.442695, %v619_v3  ;;  %v623_v51 = vsub.f32 %v2992_v23, %v3006_v30 }
 0x24a   : > { %v588_v54 = vpop.xlane.xlu0 %587 }
 0x24b   : > { %897 = vst.msk [vmem:[#allocation2 + $0x48] sm:$0xff] %vm871_vm1, %v608_v52  ;;  %710 = vperm.xlu0 %2178, %v608_v52   ;;  %v3018_v55 = vmax.f32 %v3008_v32, %v588_v54  ;;  %v624_v18 = vsub.f32 %v3001_v27, %v608_v52  ;;  %2186 = vpow2.f32 %v645_v17  ;;  %v635_v27 = vmul.f32 1.442695, %v617_v5 }
 0x24c   : > { %v590_v57 = vpop.xlane.xlu1 %589  ;;  %2188 = vpow2.f32 %v633_v63  ;;  %v647_v15 = vmul.f32 1.442695, %v623_v51 }
 0x24d   : > { %v610_v60 = vmax.f32 %v562_v53, %v590_v57  ;;  %685 = vperm.xlu1 %2179, %v2976_v13   ;;  %898 = vst.msk [vmem:[#allocation2 + $0x50] sm:$0xff] %vm871_vm1, %v3018_v55  ;;  %v649_v24 = vmul.f32 1.442695, %v624_v18  ;;  %v643_v13 = vmul.f32 1.442695, %v621_v33  ;;  %v942_v18 = vstv %s1841_s14 }
 0x24e   : > { %v592_v62 = vpop.xlane.xlu0 %591 }
 0x24f   : > { %899 = vst.msk [vmem:[#allocation2 + $0x58] sm:$0xff] %vm871_vm1, %v610_v60  ;;  %720 = vperm.xlu0 %2178, %v610_v60   ;;  %v3028_v0 = vmax.f32 %v3021_v58, %v592_v62  ;;  %v626_v25 = vsub.f32 %v562_v53, %v610_v60  ;;  %2190 = vpow2.f32 %v649_v24 }
 0x250   : > { %v594_v2 = vpop.xlane.xlu1 %593  ;;  %2192 = vpow2.f32 %v635_v27 }
 0x251   : > { %v612_v8 = vmax.f32 %v564_v61, %v594_v2  ;;  %700 = vperm.xlu1 %2179, %v606_v26   ;;  %900 = vst.msk [vmem:[#allocation2 + $0x60] sm:$0xff] %vm871_vm1, %v3028_v0  ;;  %v3060_v26 = vpop.eup %2180  ;;  %v653_v9 = vmul.f32 1.442695, %v626_v25  ;;  %v3118_v2 = vstv %s1840_s7 }
 0x252   : > { %v596_v11 = vpop.xlane.xlu0 %595  ;;  %v3066_v29 = vpop.eup %2182 }
 0x253   : > { %901 = vst.msk [vmem:[#allocation2 + $0x68] sm:$0xff] %vm871_vm1, %v612_v8  ;;  %730 = vperm.xlu0 %2178, %v612_v8   ;;  %v3041_v14 = vmax.f32 %v3030_v4, %v596_v11  ;;  %v628_v28 = vsub.f32 %v564_v61, %v612_v8  ;;  %2194 = vpow2.f32 %v653_v9  ;;  %v905_v61 = vlaneseq }
 0x254   : > { %v598_v16 = vpop.xlane.xlu1 %597  ;;  %v3071_v42 = vpop.eup %2184  ;;  %2196 = vpow2.f32 %v639_v31  ;;  %v3124_v11 = vstv %s1842_s10  ;;  %v3136_v31 = vstv %s994_s17 }
 0x255   : > { %v3045_v19 = vmax.f32 %v3035_v10, %v598_v16  ;;  %695 = vperm.xlu1 %2179, %v2990_v21   ;;  %902 = vst.msk [vmem:[#allocation2 + $0x70] sm:$0xff] %vm871_vm1, %v3041_v14  ;;  %v657_v7 = vmul.f32 1.442695, %v628_v28  ;;  %v625_v21 = vsub.f32 %v3008_v32, %v3018_v55  ;;  %v941_v16 = vand.u32 127, %v905_v61 }
 0x257   : > { %903 = vst.msk [vmem:[#allocation2 + $0x78] sm:$0xff] %vm871_vm1, %v3045_v19  ;;  %740 = vperm.xlu0 %2178, %v3045_v19   ;;  %2198 = vpow2.f32 %v657_v7  ;;  %v651_v23 = vmul.f32 1.442695, %v625_v21  ;;  %v3131_v24 = vadd.s32 %v942_v18, %v941_v16 }
 0x258   : > { %v3078_v52 = vpop.eup %2186  ;;  %2200 = vpow2.f32 %v643_v13 }
 0x259   : > { %705 = vperm.xlu1 %2179, %v3006_v30   ;;  %v3083_v53 = vpop.eup %2188  ;;  %2202 = vpow2.f32 %v647_v15  ;;  %v627_v30 = vsub.f32 %v3021_v58, %v3028_v0 }
 0x25a   : > { %2204 = vpow2.f32 %v651_v23 }
 0x25b   : > { %1190 = vperm.xlu0 %2178, %v3060_v26  }
 0x25c   : > { %v3086_v54 = vpop.eup %2190 }
 0x25d   : > { %715 = vperm.xlu1 %2179, %v3018_v55   ;;  %3547 = vst [vmem:[#allocation32_spill] sm:$0xff] %v3086_v54  ;;  %v3091_v56 = vpop.eup %2192  ;;  %v655_v55 = vmul.f32 1.442695, %v627_v30 }
 0x25f   : > { %1205 = vperm.xlu0 %2178, %v3066_v29   ;;  %2206 = vpow2.f32 %v655_v55 }
 0x260   : > { %v3094_v32 = vpop.eup %2194 }
 0x261   : > { %725 = vperm.xlu1 %2179, %v3028_v0   ;;  %3548 = vst [vmem:[#allocation33_spill] sm:$0xff] %v3094_v32  ;;  %v3097_v57 = vpop.eup %2196  ;;  %v3113_v0 = vshrl.u32 %v905_v61, 7 }
 0x263   : > { %1215 = vperm.xlu0 %2178, %v3071_v42   ;;  %v907_v6 = vadd.s32 8, %v3113_v0  ;;  %v923_v8 = vadd.s32 %v3118_v2, %v3113_v0  ;;  %v908_v5 = vadd.s32 16, %v3113_v0  ;;  %v909_v9 = vadd.s32 24, %v3113_v0 }
 0x264   : > { %v3100_v59 = vpop.eup %2198  ;;  %v910_v30 = vadd.s32 32, %v3113_v0  ;;  %v911_v16 = vadd.s32 40, %v3113_v0 }
 0x265   : > { %735 = vperm.xlu1 %2179, %v3041_v14   ;;  %3550 = vst [vmem:[#allocation34_spill] sm:$0xff] %v3100_v59  ;;  %v3103_v58 = vpop.eup %2200  ;;  %v924_v12 = vadd.s32 %v3118_v2, %v907_v6  ;;  %v946_v17 = vadd.s32 %v3124_v11, %v923_v8  ;;  %v925_v3 = vadd.s32 %v3118_v2, %v908_v5 }
 0x266   : > { %v3106_v60 = vpop.eup %2202  ;;  %v926_v13 = vadd.s32 %v3118_v2, %v909_v9 }
 0x267   : > { %1225 = vperm.xlu0 %2178, %v3078_v52   ;;  %3553 = vst [vmem:[#allocation35_spill] sm:$0xff] %v3106_v60  ;;  %v3109_v62 = vpop.eup %2204  ;;  %v947_v63 = vadd.s32 %v3124_v11, %v924_v12  ;;  %v962_v25 = vmul.u32 256, %v946_v17  ;;  %v948_v7 = vadd.s32 %v3124_v11, %v925_v3  ;;  %v927_v12 = vadd.s32 %v3118_v2, %v910_v30 }
 0x268   : > { %3554 = vst [vmem:[#allocation36_spill] sm:$0xff] %v3109_v62  ;;  %v949_v23 = vadd.s32 %v3124_v11, %v926_v13 }
 0x269   : > { %1195 = vperm.xlu1 %2179, %v3083_v53   ;;  %v963_v27 = vmul.u32 256, %v947_v63  ;;  %v978_v28 = vadd.s32 %v962_v25, %v3131_v24  ;;  %v964_v21 = vmul.u32 256, %v948_v7  ;;  %v950_v25 = vadd.s32 %v3124_v11, %v927_v12 }
 0x26a   : > { %v965_v8 = vmul.u32 256, %v949_v23 }
 0x26b   : > { %1235 = vperm.xlu0 %2178, %v3086_v54   ;;  %v979_v33 = vadd.s32 %v963_v27, %v3131_v24  ;;  %v996_v51 = vxor.u32 %v3136_v31, %v978_v28  ;;  %v980_v6 = vadd.s32 %v964_v21, %v3131_v24  ;;  %v928_v27 = vadd.s32 %v3118_v2, %v911_v16 }
 0x26c   : > { %v3115_v1 = vpop.eup %2206  ;;  %v981_v5 = vadd.s32 %v965_v8, %v3131_v24  ;;  %v966_v7 = vmul.u32 256, %v950_v25  ;;  %v912_v21 = vadd.s32 48, %v3113_v0  ;;  %v913_v8 = vadd.s32 56, %v3113_v0 }
 0x26d   : > { %1200 = vperm.xlu1 %2179, %v3091_v56   ;;  %3555 = vst [vmem:[#allocation37_spill] sm:$0xff] %v3115_v1  ;;  %v997_v15 = vxor.u32 %v3136_v31, %v979_v33  ;;  %v1012_v55 = vshrl.u32 %v996_v51, 16  ;;  %v998_v63 = vxor.u32 %v3136_v31, %v980_v6  ;;  %v951_v13 = vadd.s32 %v3124_v11, %v928_v27 }
 0x26e   : > { %v999_v33 = vxor.u32 %v3136_v31, %v981_v5  ;;  %v929_v6 = vadd.s32 %v3118_v2, %v912_v21  ;;  %v914_v27 = vadd.s32 64, %v3113_v0 }
 0x26f   : > { %1245 = vperm.xlu0 %2178, %v3094_v32   ;;  %v1013_v61 = vshrl.u32 %v997_v15, 16  ;;  %v1028_v17 = vxor.u32 %v1012_v55, %v996_v51  ;;  %v1014_v28 = vshrl.u32 %v998_v63, 16  ;;  %v982_v55 = vadd.s32 %v966_v7, %v3131_v24 }
 0x270   : > { %v1015_v30 = vshrl.u32 %v999_v33, 16  ;;  %v915_v7 = vadd.s32 72, %v3113_v0 }
 0x271   : > { %1210 = vperm.xlu1 %2179, %v3097_v57   ;;  %v1029_v18 = vxor.u32 %v1013_v61, %v997_v15  ;;  %v1044_v3 = vmul.u32 2146121005, %v1028_v17  ;;  %v1030_v23 = vxor.u32 %v1014_v28, %v998_v63  ;;  %v967_v61 = vmul.u32 256, %v951_v13 }
 0x272   : > { %v1000_v5 = vxor.u32 %v3136_v31, %v982_v55  ;;  %v952_v63 = vadd.s32 %v3124_v11, %v929_v6  ;;  %v930_v28 = vadd.s32 %v3118_v2, %v913_v8  ;;  %v916_v55 = vadd.s32 80, %v3113_v0 }
 0x273   : > { %1255 = vperm.xlu0 %2178, %v3100_v59   ;;  %v1045_v9 = vmul.u32 2146121005, %v1029_v18  ;;  %v1060_v51 = vshrl.u32 %v1044_v3, 15  ;;  %v1046_v17 = vmul.u32 2146121005, %v1030_v23  ;;  %v1031_v18 = vxor.u32 %v1015_v30, %v999_v33 }
 0x274   : > { %v983_v25 = vadd.s32 %v967_v61, %v3131_v24  ;;  %v931_v33 = vadd.s32 %v3118_v2, %v914_v27  ;;  %v932_v23 = vadd.s32 %v3118_v2, %v915_v7  ;;  %v917_v61 = vadd.s32 88, %v3113_v0 }
 0x275   : > { %1220 = vperm.xlu1 %2179, %v3103_v58   ;;  %v1061_v15 = vshrl.u32 %v1045_v9, 15  ;;  %v1076_v12 = vxor.u32 %v1060_v51, %v1044_v3  ;;  %v1062_v22 = vshrl.u32 %v1046_v17, 15  ;;  %v1047_v20 = vmul.u32 2146121005, %v1031_v18 }
 0x276   : > { %v1016_v3 = vshrl.u32 %v1000_v5, 16  ;;  %v968_v51 = vmul.u32 256, %v952_v63  ;;  %v933_v59 = vadd.s32 %v3118_v2, %v916_v55 }
 0x277   : > { %v1077_v16 = vxor.u32 %v1061_v15, %v1045_v9  ;;  %v1092_v13 = vmul.u32 2221713035, %v1076_v12  ;;  %v1001_v9 = vxor.u32 %v3136_v31, %v983_v25  ;;  %v953_v15 = vadd.s32 %v3124_v11, %v930_v28 }
 0x278   : > { %v3170_v8 = vxor.u32 %v1062_v22, %v1046_v17  ;;  %v1063_v12 = vshrl.u32 %v1047_v20, 15  ;;  %v954_v25 = vadd.s32 %v3124_v11, %v931_v33  ;;  %v984_v27 = vadd.s32 %v968_v51, %v3131_v24 }
 0x279   : > { %1230 = vperm.xlu1 %2179, %v3106_v60   ;;  %v1093_v21 = vmul.u32 2221713035, %v1077_v16  ;;  %v1108_v30 = vshrl.u32 %v1092_v13, 16  ;;  %v1032_v16 = vxor.u32 %v1016_v3, %v1000_v5  ;;  %v1017_v18 = vshrl.u32 %v1001_v9, 16 }
 0x27a   : > { %v969_v63 = vmul.u32 256, %v953_v15  ;;  %v955_v28 = vadd.s32 %v3124_v11, %v932_v23  ;;  %v918_v22 = vadd.s32 96, %v3113_v0  ;;  %v1094_v3 = vmul.u32 2221713035, %v3170_v8 }
 0x27b   : > { %v1109_v6 = vshrl.u32 %v1093_v21, 16  ;;  %v3175_v7 = vxor.u32 %v1108_v30, %v1092_v13  ;;  %v919_v33 = vadd.s32 104, %v3113_v0  ;;  %v3185_v51 = vxor.u32 %v1063_v12, %v1047_v20 }
 0x27c   : > { %v1048_v15 = vmul.u32 2146121005, %v1032_v16  ;;  %v1033_v23 = vxor.u32 %v1017_v18, %v1001_v9  ;;  %v970_v13 = vmul.u32 256, %v954_v25  ;;  %v1002_v55 = vxor.u32 %v3136_v31, %v984_v27 }
 0x27d   : > { %1240 = vperm.xlu1 %2179, %v3109_v62   ;;  %v934_v62 = vadd.s32 %v3118_v2, %v917_v61  ;;  %v3181_v5 = vxor.u32 %v1109_v6, %v1093_v21  ;;  %v985_v61 = vadd.s32 %v969_v63, %v3131_v24  ;;  %v971_v32 = vmul.u32 256, %v955_v28 }
 0x27e   : > { %v935_v21 = vadd.s32 %v3118_v2, %v918_v22  ;;  %v920_v6 = vadd.s32 112, %v3113_v0  ;;  %v936_v9 = vadd.s32 %v3118_v2, %v919_v33  ;;  %v921_v8 = vadd.s32 120, %v3113_v0 }
 0x27f   : > { %v1110_v12 = vshrl.u32 %v1094_v3, 16  ;;  %v1064_v16 = vshrl.u32 %v1048_v15, 15  ;;  %v1049_v18 = vmul.u32 2146121005, %v1033_v23  ;;  %v986_v25 = vadd.s32 %v970_v13, %v3131_v24 }
 0x280   : > { %v987_v63 = vadd.s32 %v971_v32, %v3131_v24  ;;  %vm1140_vm2 = vcmp.ge.u32.totalorder %v3175_v7, 858993459  ;;  %v937_v0 = vadd.s32 %v3118_v2, %v920_v6  ;;  %v959_v33 = vadd.s32 %v3124_v11, %v936_v9 }
 0x281   : > { %1250 = vperm.xlu1 %2179, %v3115_v1   ;;  %v938_v23 = vadd.s32 %v3118_v2, %v921_v8  ;;  %v1095_v13 = vmul.u32 2221713035, %v3185_v51  ;;  %v1065_v32 = vshrl.u32 %v1049_v18, 15  ;;  %vm1141_vm3 = vcmp.ge.u32.totalorder %v3181_v5, 858993459 }
 0x282   : > { %v960_v2 = vadd.s32 %v3124_v11, %v937_v0 }
 0x283   : > { %v961_v8 = vadd.s32 %v3124_v11, %v938_v23 }
 0x2b4   : > { %v666_v1 = vpop.permute.xlu0 %665 }
 0x2b5   : > { %v743_v17 = vsub.f32 %v2884_v35, %v666_v1  ;;  %v956_v35 = vadd.s32 %v3124_v11, %v933_v59  ;;  %v957_v1 = vadd.s32 %v3124_v11, %v934_v62  ;;  %v1018_v59 = vshrl.u32 %v1002_v55, 16 }
 0x2b6   : > { %v1003_v62 = vxor.u32 %v3136_v31, %v985_v61  ;;  %v1004_v61 = vxor.u32 %v3136_v31, %v986_v25  ;;  %v1081_v25 = vxor.u32 %v1065_v32, %v1049_v18 }
 0x2b7   : > { %v759_v30 = vmul.f32 1.442695, %v743_v17  ;;  %v972_v22 = vmul.u32 256, %v956_v35  ;;  %v1034_v35 = vxor.u32 %v1018_v59, %v1002_v55  ;;  %v3214_v55 = vxor.u32 %v1110_v12, %v1094_v3 }
 0x2b8   : > { %v671_v60 = vpop.permute.xlu1 %670  ;;  %v977_v12 = vmul.u32 256, %v961_v8  ;;  %v1097_v23 = vmul.u32 2221713035, %v1081_v25 }
 0x2b9   : > { %2208 = vpow2.f32 %v759_v30  ;;  %v744_v20 = vsub.f32 %v2882_v34, %v671_v60  ;;  %v973_v34 = vmul.u32 256, %v957_v1  ;;  %v958_v60 = vadd.s32 %v3124_v11, %v935_v21 }
 0x2ba   : > { %v1080_v30 = vxor.u32 %v1064_v16, %v1048_v15  ;;  %v1019_v1 = vshrl.u32 %v1003_v62, 16  ;;  %v1005_v21 = vxor.u32 %v3136_v31, %v987_v63  ;;  %v975_v15 = vmul.u32 256, %v959_v33 }
 0x2bb   : > { %v761_v27 = vmul.f32 1.442695, %v744_v20  ;;  %v989_v6 = vadd.s32 %v973_v34, %v3131_v24  ;;  %v974_v9 = vmul.u32 256, %v958_v60  ;;  %v1050_v63 = vmul.u32 2146121005, %v1034_v35 }
 0x2bc   : > { %v681_v28 = vpop.permute.xlu1 %680  ;;  %v1096_v16 = vmul.u32 2221713035, %v1080_v30  ;;  %v991_v3 = vadd.s32 %v975_v15, %v3131_v24  ;;  %vm1142_vm4 = vcmp.ge.u32.totalorder %v3214_v55, 858993459  ;;  %v1113_v25 = vshrl.u32 %v1097_v23, 16 }
 0x2bd   : > { %2210 = vpow2.f32 %v761_v27  ;;  %v746_v17 = vsub.f32 %v2887_v36, %v681_v28  ;;  %v988_v36 = vadd.s32 %v972_v22, %v3131_v24  ;;  %v1020_v27 = vshrl.u32 %v1004_v61, 16 }
 0x2be   : > { %v3216_v28 = vxor.u32 %v1019_v1, %v1003_v62  ;;  %v1021_v22 = vshrl.u32 %v1005_v21, 16  ;;  %v1007_v0 = vxor.u32 %v3136_v31, %v989_v6  ;;  %v1111_v62 = vshrl.u32 %v1095_v13, 16 }
 0x2bf   : > { %v765_v20 = vmul.f32 1.442695, %v746_v17  ;;  %v1006_v60 = vxor.u32 %v3136_v31, %v988_v36  ;;  %v1112_v33 = vshrl.u32 %v1096_v16, 16  ;;  %v3225_v30 = vxor.u32 %v1020_v27, %v1004_v61 }
 0x2c0   : > { %v676_v54 = vpop.permute.xlu1 %675  ;;  %v1051_v35 = vmul.u32 2146121005, %v3216_v28  ;;  %v1023_v6 = vshrl.u32 %v1007_v0, 16  ;;  %v1009_v7 = vxor.u32 %v3136_v31, %v991_v3  ;;  %v1127_v8 = vxor.u32 %v1111_v62, %v1095_v13 }
 0x2c1   : > { %2212 = vpow2.f32 %v765_v20  ;;  %v745_v51 = vsub.f32 %v2890_v37, %v676_v54  ;;  %v990_v37 = vadd.s32 %v974_v9, %v3131_v24  ;;  %v976_v54 = vmul.u32 256, %v960_v2 }
 0x2c2   : > { %v1066_v20 = vshrl.u32 %v1050_v63, 15  ;;  %v1022_v36 = vshrl.u32 %v1006_v60, 16  ;;  %v1052_v27 = vmul.u32 2146121005, %v3225_v30  ;;  %v1025_v3 = vshrl.u32 %v1009_v7, 16 }
 0x2c3   : > { %v763_v59 = vmul.f32 1.442695, %v745_v51  ;;  %v1008_v9 = vxor.u32 %v3136_v31, %v990_v37  ;;  %v992_v61 = vadd.s32 %v976_v54, %v3131_v24  ;;  %v993_v51 = vadd.s32 %v977_v12, %v3131_v24 }
 0x2c4   : > { %v691_v34 = vpop.permute.xlu1 %690  ;;  %v1038_v24 = vxor.u32 %v1022_v36, %v1006_v60  ;;  %v1039_v54 = vxor.u32 %v1023_v6, %v1007_v0  ;;  %vm1143_vm5 = vcmp.ge.u32.totalorder %v1127_v8, 858993459  ;;  %v1068_v62 = vshrl.u32 %v1052_v27, 15 }
 0x2c5   : > { %2214 = vpow2.f32 %v763_v59  ;;  %v748_v11 = vsub.f32 %v2893_v38, %v691_v34  ;;  %v3230_v38 = vxor.u32 %v1021_v22, %v1005_v21  ;;  %v3238_v21 = vxor.u32 %v1112_v33, %v1096_v16 }
 0x2c6   : > { %v2209_v18 = vpop.eup %2208  ;;  %v3223_v17 = vpop.permute.xlu0 %710  ;;  %v3243_v22 = vxor.u32 %v1066_v20, %v1050_v63  ;;  %v1024_v13 = vshrl.u32 %v1008_v9, 16  ;;  %v1010_v16 = vxor.u32 %v3136_v31, %v992_v61  ;;  %v1011_v12 = vxor.u32 %v3136_v31, %v993_v51 }
 0x2c7   : > { %v769_v32 = vmul.f32 1.442695, %v748_v11  ;;  %823 = vadd.xlane.f32.xlu1 %v2209_v18  ;;  %2018 = vmatprep.mubr.msk.f32.mxu1 %vm1140_vm2, %v2209_v18  ;;  %v1053_v34 = vmul.u32 2146121005, %v3230_v38  ;;  %v752_v5 = vsub.f32 %v2905_v43, %v3223_v17  ;;  %v3251_v63 = vxor.u32 %v1113_v25, %v1097_v23 }
 0x2c8   : > { %v686_v1 = vpop.permute.xlu1 %685  ;;  %v1098_v60 = vmul.u32 2221713035, %v3243_v22  ;;  %vm1144_vm6 = vcmp.ge.u32.totalorder %v3238_v21, 858993459  ;;  %v1055_v20 = vmul.u32 2146121005, %v1039_v54  ;;  %v3255_v31 = vxor.u32 %v1024_v13, %v1008_v9 }
 0x2c9   : > { %2216 = vpow2.f32 %v769_v32  ;;  %v747_v2 = vsub.f32 %v2896_v39, %v686_v1  ;;  %v1067_v39 = vshrl.u32 %v1051_v35, 15  ;;  %v1069_v30 = vshrl.u32 %v1053_v34, 15 }
 0x2ca   : > { %v2211_v15 = vpop.eup %2210  ;;  %v721_v28 = vpop.permute.xlu0 %720  ;;  %v1026_v38 = vshrl.u32 %v1010_v16, 16  ;;  %v1041_v23 = vxor.u32 %v1025_v3, %v1009_v7  ;;  %v1027_v1 = vshrl.u32 %v1011_v12, 16  ;;  %v777_v6 = vmul.f32 1.442695, %v752_v5 }
 0x2cb   : > { %v767_v59 = vmul.f32 1.442695, %v747_v2  ;;  %825 = vadd.xlane.f32.xlu0 %v2211_v15  ;;  %2019 = vmatmul.mubr.msk.f32.vlgmr.msra.gmra.mxu1 %vm1141_vm3, %v2211_v15  ;;  %v1083_v0 = vxor.u32 %v1067_v39, %v1051_v35  ;;  %v754_v61 = vsub.f32 %v2911_v45, %v721_v28  ;;  %vm1145_vm7 = vcmp.ge.u32.totalorder %v3251_v63, 858993459 }
 0x2cc   : > { %v701_v37 = vpop.permute.xlu1 %700  ;;  %v3260_v35 = vxor.u32 %v1068_v62, %v1052_v27  ;;  %v1114_v9 = vshrl.u32 %v1098_v60, 16  ;;  %v1085_v15 = vxor.u32 %v1069_v30, %v1053_v34  ;;  %v1071_v7 = vshrl.u32 %v1055_v20, 15 }
 0x2cd   : > { %2218 = vpow2.f32 %v767_v59  ;;  %v750_v11 = vsub.f32 %v2899_v40, %v701_v37  ;;  %v1054_v40 = vmul.u32 2146121005, %v1038_v24  ;;  %v1099_v51 = vmul.u32 2221713035, %v1083_v0 }
 0x2ce   : > { %v2213_v18 = vpop.eup %2212  ;;  %v731_v43 = vpop.permute.xlu0 %730  ;;  %v1056_v59 = vmul.u32 2146121005, %v3255_v31  ;;  %v1042_v45 = vxor.u32 %v1026_v38, %v1010_v16  ;;  %v1057_v28 = vmul.u32 2146121005, %v1041_v23  ;;  %v1043_v22 = vxor.u32 %v1027_v1, %v1011_v12 }
 0x2cf   : > { %v773_v33 = vmul.f32 1.442695, %v750_v11  ;;  %829 = vadd.xlane.f32.xlu1 %v2213_v18  ;;  %v781_v55 = vmul.f32 1.442695, %v754_v61  ;;  %v756_v37 = vsub.f32 %v2917_v47, %v731_v43  ;;  %v1100_v34 = vmul.u32 2221713035, %v3260_v35 }
 0x2d0   : > { %v696_v32 = vpop.permute.xlu1 %695  ;;  %v1115_v54 = vshrl.u32 %v1099_v51, 16  ;;  %v1101_v13 = vmul.u32 2221713035, %v1085_v15  ;;  %v1087_v16 = vxor.u32 %v1071_v7, %v1055_v20  ;;  %v1058_v5 = vmul.u32 2146121005, %v1042_v45 }
 0x2d1   : > { %2220 = vpow2.f32 %v773_v33  ;;  %v749_v17 = vsub.f32 %v2902_v41, %v696_v32  ;;  %v1070_v41 = vshrl.u32 %v1054_v40, 15  ;;  %v1073_v12 = vshrl.u32 %v1057_v28, 15 }
 0x2d2   : > { %v2215_v36 = vpop.eup %2214  ;;  %v741_v24 = vpop.permute.xlu0 %740  ;;  %v1059_v62 = vmul.u32 2146121005, %v1043_v22  ;;  %v785_v47 = vmul.f32 1.442695, %v756_v37  ;;  %v1130_v30 = vxor.u32 %v1114_v9, %v1098_v60  ;;  %v1116_v20 = vshrl.u32 %v1100_v34, 16 }
 0x2d3   : > { %v771_v2 = vmul.f32 1.442695, %v749_v17  ;;  %827 = vadd.xlane.f32.xlu0 %v2215_v36  ;;  %2021 = vmatprep.mubr.msk.f32.mxu1 %vm1142_vm4, %v2215_v36  ;;  %v1086_v3 = vxor.u32 %v1070_v41, %v1054_v40  ;;  %v758_v0 = vsub.f32 %v2923_v49, %v741_v24  ;;  %v1131_v40 = vxor.u32 %v1115_v54, %v1099_v51 }
 0x2d4   : > { %v706_v25 = vpop.permute.xlu1 %705  ;;  %2022 = vmatmul.mubr.msk.f32.gmra.mxu1 %vm1143_vm5, %v2213_v18  ;;  %v1072_v18 = vshrl.u32 %v1056_v59, 15  ;;  %v1117_v31 = vshrl.u32 %v1101_v13, 16  ;;  %v1103_v43 = vmul.u32 2221713035, %v1087_v16  ;;  %v1074_v23 = vshrl.u32 %v1058_v5, 15 }
 0x2d5   : > { %2222 = vpow2.f32 %v771_v2  ;;  %v751_v27 = vsub.f32 %v2908_v44, %v706_v25  ;;  %v1089_v60 = vxor.u32 %v1073_v12, %v1057_v28  ;;  %v1075_v1 = vshrl.u32 %v1059_v62, 15 }
 0x2d6   : > { %v2217_v39 = vpop.eup %2216  ;;  %2224 = vpow2.f32 %v777_v6  ;;  %v1088_v17 = vxor.u32 %v1072_v18, %v1056_v59  ;;  %v789_v21 = vmul.f32 1.442695, %v758_v0  ;;  %vm1146_vm8 = vcmp.ge.u32.totalorder %v1130_v30, 858993459 }
 0x2d7   : > { %v775_v8 = vmul.f32 1.442695, %v751_v27  ;;  %833 = vadd.xlane.f32.xlu1 %v2217_v39  ;;  %vm1147_vm9 = vcmp.ge.u32.totalorder %v1131_v40, 858993459  ;;  %v1132_v61 = vxor.u32 %v1116_v20, %v1100_v34  ;;  %v1133_v35 = vxor.u32 %v1117_v31, %v1101_v13 }
 0x2d8   : > { %v716_v11 = vpop.permute.xlu1 %715  ;;  %v1119_v9 = vshrl.u32 %v1103_v43, 16  ;;  %v1104_v51 = vmul.u32 2221713035, %v1088_v17  ;;  %v1090_v15 = vxor.u32 %v1074_v23, %v1058_v5  ;;  %v1091_v41 = vxor.u32 %v1075_v1, %v1059_v62 }
 0x2d9   : > { %2226 = vpow2.f32 %v775_v8  ;;  %v753_v44 = vsub.f32 %v2914_v46, %v716_v11  ;;  %v1102_v46 = vmul.u32 2221713035, %v1086_v3  ;;  %vm1148_vm10 = vcmp.ge.u32.totalorder %v1132_v61, 858993459 }
 0x2da   : > { %v2219_v33 = vpop.eup %2218  ;;  %2228 = vpow2.f32 %v781_v55  ;;  %vm1149_vm11 = vcmp.ge.u32.totalorder %v1133_v35, 858993459  ;;  %v1120_v28 = vshrl.u32 %v1104_v51, 16  ;;  %v1106_v22 = vmul.u32 2221713035, %v1090_v15 }
 0x2db   : > { %v779_v32 = vmul.f32 1.442695, %v753_v44  ;;  %831 = vadd.xlane.f32.xlu0 %v2219_v33  ;;  %2024 = vmatprep.mubr.msk.f32.mxu1 %vm1144_vm6, %v2219_v33  ;;  %v1118_v2 = vshrl.u32 %v1102_v46, 16  ;;  %v1107_v55 = vmul.u32 2221713035, %v1091_v41  ;;  %v3556_v12 = vsub.f32 %v3030_v4, %v3041_v14 }
 0x2dc   : > { %v726_v38 = vpop.permute.xlu1 %725  ;;  %2025 = vmatmul.mubr.msk.f32.gmra.mxu1 %vm1145_vm7, %v2217_v39  ;;  %v1135_v39 = vxor.u32 %v1119_v9, %v1103_v43  ;;  %v1136_v24 = vxor.u32 %v1120_v28, %v1104_v51  ;;  %v1122_v8 = vshrl.u32 %v1106_v22, 16 }
 0x2dd   : > { %2230 = vpow2.f32 %v779_v32  ;;  %v755_v49 = vsub.f32 %v2920_v48, %v726_v38  ;;  %v1105_v48 = vmul.u32 2221713035, %v1089_v60  ;;  %v1134_v27 = vxor.u32 %v1118_v2, %v1102_v46  ;;  %v3293_v32 = vpop.permute.xlu0 %1190  ;;  %v791_v60 = vld [vmem:[#allocation3] sm:$0xff]  ;;  %v794_v2 = vld [vmem:[#allocation3 + $0x18] sm:$0xff] }
 0x2de   : > { %v2221_v36 = vpop.eup %2220  ;;  %2232 = vpow2.f32 %v785_v47  ;;  %vm1151_vm13 = vcmp.ge.u32.totalorder %v1135_v39, 858993459  ;;  %v1123_v13 = vshrl.u32 %v1107_v55, 16  ;;  %vm1152_vm14 = vcmp.ge.u32.totalorder %v1136_v24, 858993459  ;;  %v798_v39 = vld [vmem:[#allocation3 + $0x38] sm:$0xff] }
 0x2df   : > { %v783_v6 = vmul.f32 1.442695, %v755_v49  ;;  %837 = vadd.xlane.f32.xlu1 %v2221_v36  ;;  %vm1150_vm12 = vcmp.ge.u32.totalorder %v1134_v27, 858993459  ;;  %v1138_v16 = vxor.u32 %v1122_v8, %v1106_v22  ;;  %v659_v62 = vmul.f32 1.442695, %v3556_v12 }
 0x2e0   : > { %v736_v63 = vpop.permute.xlu1 %735  ;;  %v1139_v18 = vxor.u32 %v1123_v13, %v1107_v55  ;;  %v3557_v47 = vsub.f32 %v3035_v10, %v3045_v19  ;;  %v807_v1 = vmul.f32 %v3060_v26, %v791_v60  ;;  %v810_v51 = vmul.f32 %v3066_v29, %v794_v2  ;;  %v795_v27 = vld [vmem:[#allocation3 + $0x20] sm:$0xff]  ;;  %v800_v24 = vld [vmem:[#allocation3 + $0x48] sm:$0xff] }
 0x2e1   : > { %2234 = vpow2.f32 %v783_v6  ;;  %v757_v25 = vsub.f32 %v2926_v50, %v736_v63  ;;  %v1121_v50 = vshrl.u32 %v1105_v48, 16  ;;  %vm1154_vm0 = vcmp.ge.u32.totalorder %v1138_v16, 858993459  ;;  %v3297_v20 = vpop.permute.xlu0 %1205  ;;  %v792_v6 = vld [vmem:[#allocation3 + $0x8] sm:$0xff]  ;;  %v3558_v8 = vld [vmem:[#allocation32_spill] sm:$0xff]  ;;  %v802_v16 = vld [vmem:[#allocation3 + $0x58] sm:$0xff] }
 0x2e2   : > { %v2223_v7 = vpop.eup %2222  ;;  %2236 = vpow2.f32 %v789_v21  ;;  %vm1155_vm2 = vcmp.ge.u32.totalorder %v1139_v18, 858993459  ;;  %v661_v0 = vmul.f32 1.442695, %v3557_v47  ;;  %v808_v35 = vmul.f32 %v3083_v53, %v792_v6  ;;  %v3562_v6 = vld [vmem:[#allocation34_spill] sm:$0xff] }
 0x2e3   : > { %v2225_v59 = vpop.eup %2224  ;;  %v787_v45 = vmul.f32 1.442695, %v757_v25  ;;  %835 = vadd.xlane.f32.xlu0 %v2223_v7  ;;  %2027 = vmatprep.mubr.msk.f32.mxu1 %vm1146_vm8, %v2223_v7  ;;  %v1137_v54 = vxor.u32 %v1121_v50, %v1105_v48  ;;  %v793_v25 = vld [vmem:[#allocation3 + $0x10] sm:$0xff]  ;;  %v796_v7 = vld [vmem:[#allocation3 + $0x28] sm:$0xff]  ;;  %v811_v29 = vmul.f32 %v3097_v57, %v795_v27 }
 0x2e4   : > { %841 = vadd.xlane.f32.xlu1 %v2225_v59  ;;  %2028 = vmatmul.mubr.msk.f32.gmra.mxu1 %vm1147_vm9, %v2221_v36  ;;  %v3291_v14 = vpop.permute.xlu1 %1195  ;;  %v809_v26 = vmul.f32 %v3091_v56, %v793_v25  ;;  %v812_v53 = vmul.f32 %v3071_v42, %v796_v7  ;;  %v814_v56 = vmul.f32 %v3078_v52, %v798_v39  ;;  %v3563_v25 = vld [vmem:[#allocation37_spill] sm:$0xff]  ;;  %v805_v7 = vld [vmem:[#allocation3 + $0x70] sm:$0xff] }
 0x2e5   : > { %2238 = vpow2.f32 %v787_v45  ;;  %vm1153_vm15 = vcmp.ge.u32.totalorder %v1137_v54, 858993459  ;;  %v3301_v10 = vpop.permute.xlu0 %1215  ;;  %v816_v54 = vmul.f32 %v3558_v8, %v800_v24  ;;  %v1172_v39 = vld [vmem:[#allocation4 + $0x30] sm:$0xff]  ;;  %v1175_v24 = vld [vmem:[#allocation4 + $0x18] sm:$0xff] }
 0x2e6   : > { %v2227_v37 = vpop.eup %2226  ;;  %2240 = vpow2.f32 %v659_v62 }
 0x2e7   : > { %v2229_v34 = vpop.eup %2228  ;;  %839 = vadd.xlane.f32.xlu0 %v2227_v37  ;;  %2030 = vmatprep.mubr.msk.f32.mxu1 %vm1148_vm10, %v2227_v37  ;;  %2242 = vpow2.f32 %v661_v0  ;;  %v797_v37 = vld [vmem:[#allocation3 + $0x30] sm:$0xff]  ;;  %v804_v0 = vld [vmem:[#allocation3 + $0x68] sm:$0xff] }
 0x2e8   : > { %845 = vadd.xlane.f32.xlu1 %v2229_v34  ;;  %2031 = vmatmul.mubr.msk.f32.gmra.mxu1 %vm1149_vm11, %v2225_v59  ;;  %v3295_v40 = vpop.permute.xlu1 %1200  ;;  %v813_v42 = vmul.f32 %v3103_v58, %v797_v37 }
 0x2e9   : > { %v3305_v38 = vpop.permute.xlu0 %1225 }
 0x2ea   : > { %v2231_v11 = vpop.eup %2230 }
 0x2eb   : > { %v2233_v3 = vpop.eup %2232  ;;  %843 = vadd.xlane.f32.xlu0 %v2231_v11  ;;  %2033 = vmatprep.mubr.msk.f32.mxu1 %vm1150_vm12, %v2231_v11  ;;  %v799_v11 = vld [vmem:[#allocation3 + $0x40] sm:$0xff] }
 0x2ec   : > { %849 = vadd.xlane.f32.xlu1 %v2233_v3  ;;  %2034 = vmatmul.mubr.msk.f32.gmra.mxu1 %vm1151_vm13, %v2229_v34  ;;  %v3299_v31 = vpop.permute.xlu1 %1210 }
 0x2ed   : > { %v3309_v43 = vpop.permute.xlu0 %1235 }
 0x2ee   : > { %v2235_v5 = vpop.eup %2234 }
 0x2ef   : > { %v2237_v44 = vpop.eup %2236  ;;  %847 = vadd.xlane.f32.xlu0 %v2235_v5  ;;  %2036 = vmatprep.mubr.msk.f32.mxu1 %vm1152_vm14, %v2235_v5  ;;  %v3559_v5 = vld [vmem:[#allocation35_spill] sm:$0xff] }
 0x2f0   : > { %853 = vadd.xlane.f32.xlu1 %v2237_v44  ;;  %2037 = vmatmul.mubr.msk.f32.gmra.mxu1 %vm1153_vm15, %v2233_v3  ;;  %v3303_v19 = vpop.permute.xlu1 %1220  ;;  %v815_v52 = vmul.f32 %v3559_v5, %v799_v11 }
 0x2f1   : > { %v3313_v23 = vpop.permute.xlu0 %1245 }
 0x2f2   : > { %v2239_v33 = vpop.eup %2238 }
 0x2f3   : > { %851 = vadd.xlane.f32.xlu0 %v2239_v33  ;;  %2039 = vmatprep.mubr.msk.f32.mxu1 %vm1154_vm0, %v2239_v33  ;;  %v3285_v30 = vpop.eup %2240  ;;  %v801_v33 = vld [vmem:[#allocation3 + $0x50] sm:$0xff] }
 0x2f4   : > { %2040 = vmatmul.mubr.msk.f32.gmra.mxu1 %vm1155_vm2, %v2237_v44  ;;  %v3288_v4 = vpop.eup %2242  ;;  %v3307_v46 = vpop.permute.xlu1 %1230  ;;  %v3560_v44 = vld [vmem:[#allocation33_spill] sm:$0xff]  ;;  %v821_v27 = vmul.f32 %v3285_v30, %v805_v7 }
 0x2f5   : > { %v3318_v36 = vpop.permute.xlu0 %1255  ;;  %v818_v12 = vmul.f32 %v3560_v44, %v802_v16 }
 0x2f8   : > { %v3311_v17 = vpop.permute.xlu1 %1240 }
 0x2fc   : > { %v3315_v49 = vpop.permute.xlu1 %1250 }
 0x301   : > { %1260 = vperm.xlu1 %2179, %v3285_v30   ;;  %v1174_v30 = vld [vmem:[#allocation4 + $0x58] sm:$0xff] }
 0x309   : > { %1265 = vperm.xlu0 %2178, %v3288_v4  }
 0x350   : > { %v824_v21 = vpop.xlane.xlu1 %823 }
 0x351   : > { %v855_v61 = vadd.f32 %v824_v21, %v807_v1  ;;  %v3561_v1 = vld [vmem:[#allocation36_spill] sm:$0xff] }
 0x352   : > { %v817_v21 = vmul.f32 %v3561_v1, %v801_v33  ;;  %v1183_v1 = vld [vmem:[#allocation4 + $0x38] sm:$0xff] }
 0x353   : > { %872 = vst.msk [vmem:[#allocation3] sm:$0xff] %vm871_vm1, %v855_v61  ;;  %v820_v61 = vmul.f32 %v3562_v6, %v804_v0  ;;  %v1180_v0 = vld [vmem:[#allocation4 + $0x40] sm:$0xff] }
 0x354   : > { %v826_v63 = vpop.xlane.xlu0 %825  ;;  %v1276_v6 = vmul.f32 %v3307_v46, %v1180_v0 }
 0x355   : > { %v856_v9 = vadd.f32 %v826_v63, %v808_v35  ;;  %v803_v63 = vld [vmem:[#allocation3 + $0x60] sm:$0xff] }
 0x357   : > { %873 = vst.msk [vmem:[#allocation3 + $0x8] sm:$0xff] %vm871_vm1, %v856_v9 }
 0x358   : > { %v830_v15 = vpop.xlane.xlu1 %829 }
 0x359   : > { %v858_v48 = vadd.f32 %v830_v15, %v810_v51  ;;  %v806_v51 = vld [vmem:[#allocation3 + $0x78] sm:$0xff] }
 0x35b   : > { %875 = vst.msk [vmem:[#allocation3 + $0x18] sm:$0xff] %vm871_vm1, %v858_v48  ;;  %v819_v48 = vmul.f32 %v3563_v25, %v803_v63 }
 0x35c   : > { %v828_v41 = vpop.xlane.xlu0 %827 }
 0x35d   : > { %v857_v59 = vadd.f32 %v828_v41, %v809_v26  ;;  %v822_v26 = vmul.f32 %v3288_v4, %v806_v51 }
 0x35f   : > { %874 = vst.msk [vmem:[#allocation3 + $0x10] sm:$0xff] %vm871_vm1, %v857_v59 }
 0x360   : > { %v834_v45 = vpop.xlane.xlu1 %833 }
 0x361   : > { %v860_v28 = vadd.f32 %v834_v45, %v812_v53 }
 0x363   : > { %877 = vst.msk [vmem:[#allocation3 + $0x28] sm:$0xff] %vm871_vm1, %v860_v28 }
 0x364   : > { %v832_v22 = vpop.xlane.xlu0 %831 }
 0x365   : > { %v859_v50 = vadd.f32 %v832_v22, %v811_v29  ;;  %v1173_v22 = vld [vmem:[#allocation4] sm:$0xff] }
 0x367   : > { %876 = vst.msk [vmem:[#allocation3 + $0x20] sm:$0xff] %vm871_vm1, %v859_v50  ;;  %v1269_v50 = vmul.f32 %v3291_v14, %v1173_v22  ;;  %v1177_v14 = vld [vmem:[#allocation4 + $0x68] sm:$0xff] }
 0x368   : > { %v838_v55 = vpop.xlane.xlu1 %837 }
 0x369   : > { %v862_v34 = vadd.f32 %v838_v55, %v814_v56  ;;  %v1268_v56 = vmul.f32 %v3293_v32, %v1172_v39  ;;  %v1273_v32 = vmul.f32 %v3301_v10, %v1177_v14 }
 0x36b   : > { %879 = vst.msk [vmem:[#allocation3 + $0x38] sm:$0xff] %vm871_vm1, %v862_v34 }
 0x36c   : > { %v836_v13 = vpop.xlane.xlu0 %835 }
 0x36d   : > { %v842_v57 = vpop.xlane.xlu1 %841  ;;  %v861_v3 = vadd.f32 %v836_v13, %v813_v42  ;;  %v1271_v42 = vmul.f32 %v3297_v20, %v1175_v24  ;;  %v1179_v20 = vld [vmem:[#allocation4 + $0x48] sm:$0xff] }
 0x36e   : > { %v864_v18 = vadd.f32 %v842_v57, %v816_v54  ;;  %v1270_v54 = vmul.f32 %v3295_v40, %v1174_v30  ;;  %v1275_v40 = vmul.f32 %v3305_v38, %v1179_v20  ;;  %v1279_v38 = vmul.f32 %v3313_v23, %v1183_v1 }
 0x36f   : > { %878 = vst.msk [vmem:[#allocation3 + $0x30] sm:$0xff] %vm871_vm1, %v861_v3  ;;  %v1176_v3 = vld [vmem:[#allocation4 + $0x50] sm:$0xff] }
 0x370   : > { %881 = vst.msk [vmem:[#allocation3 + $0x48] sm:$0xff] %vm871_vm1, %v864_v18  ;;  %v840_v62 = vpop.xlane.xlu0 %839  ;;  %v1272_v18 = vmul.f32 %v3299_v31, %v1176_v3 }
 0x371   : > { %v846_v47 = vpop.xlane.xlu1 %845  ;;  %v863_v58 = vadd.f32 %v840_v62, %v815_v52  ;;  %v1181_v62 = vld [vmem:[#allocation4 + $0x20] sm:$0xff] }
 0x372   : > { %v866_v60 = vadd.f32 %v846_v47, %v818_v12  ;;  %v1178_v12 = vld [vmem:[#allocation4 + $0x8] sm:$0xff]  ;;  %v1277_v10 = vmul.f32 %v3309_v43, %v1181_v62 }
 0x373   : > { %880 = vst.msk [vmem:[#allocation3 + $0x40] sm:$0xff] %vm871_vm1, %v863_v58  ;;  %v1274_v47 = vmul.f32 %v3303_v19, %v1178_v12  ;;  %v1185_v19 = vld [vmem:[#allocation4 + $0x70] sm:$0xff] }
 0x374   : > { %883 = vst.msk [vmem:[#allocation3 + $0x58] sm:$0xff] %vm871_vm1, %v866_v60  ;;  %v844_v35 = vpop.xlane.xlu0 %843 }
 0x375   : > { %v850_v2 = vpop.xlane.xlu1 %849  ;;  %v865_v9 = vadd.f32 %v844_v35, %v817_v21  ;;  %v1182_v35 = vld [vmem:[#allocation4 + $0x10] sm:$0xff] }
 0x376   : > { %v868_v15 = vadd.f32 %v850_v2, %v820_v61  ;;  %v1278_v51 = vmul.f32 %v3311_v17, %v1182_v35 }
 0x377   : > { %882 = vst.msk [vmem:[#allocation3 + $0x50] sm:$0xff] %vm871_vm1, %v865_v9 }
 0x378   : > { %885 = vst.msk [vmem:[#allocation3 + $0x68] sm:$0xff] %vm871_vm1, %v868_v15  ;;  %v848_v41 = vpop.xlane.xlu0 %847  ;;  %v1184_v15 = vld [vmem:[#allocation4 + $0x60] sm:$0xff] }
 0x379   : > { %v854_v59 = vpop.xlane.xlu1 %853  ;;  %v867_v53 = vadd.f32 %v848_v41, %v819_v48  ;;  %v1281_v48 = vmul.f32 %v3318_v36, %v1185_v19 }
 0x37a   : > { %v870_v45 = vadd.f32 %v854_v59, %v822_v26  ;;  %v1187_v26 = vld [vmem:[#allocation4 + $0x28] sm:$0xff]  ;;  %v1280_v59 = vmul.f32 %v3315_v49, %v1184_v15 }
 0x37b   : > { %884 = vst.msk [vmem:[#allocation3 + $0x60] sm:$0xff] %vm871_vm1, %v867_v53  ;;  %v1186_v53 = vld [vmem:[#allocation4 + $0x78] sm:$0xff] }
 0x37c   : > { %887 = vst.msk [vmem:[#allocation3 + $0x78] sm:$0xff] %vm871_vm1, %v870_v45  ;;  %v852_v28 = vpop.xlane.xlu0 %851 }
 0x37d   : > { %v869_v29 = vadd.f32 %v852_v28, %v821_v27  ;;  %v1261_v45 = vpop.permute.xlu1 %1260 }
 0x37e   : > { %v1282_v22 = vmul.f32 %v1261_v45, %v1186_v53 }
 0x37f   : > { %886 = vst.msk [vmem:[#allocation3 + $0x70] sm:$0xff] %vm871_vm1, %v869_v29 }
 0x384   : > { %v1266_v41 = vpop.permute.xlu0 %1265 }
 0x385   : > { %v1283_v28 = vmul.f32 %v1266_v41, %v1187_v26 }
 0x38b   : > { %v2020_v4 = vpop.f32.mrf.mxu1 }
 0x38c   : > { %v1430_v55 = vadd.f32 %v2020_v4, %v1269_v50 }
 0x38d   : > { %v1350_v37 = vpop.f32.mrf.mxu1 }
 0x38e   : > { %1446 = vst [vmem:[#allocation4] sm:$0xff] %v1430_v55  ;;  %v1429_v34 = vadd.f32 %v1350_v37, %v1268_v56 }
 0x390   : > { %1445 = vst [vmem:[#allocation4 + $0x30] sm:$0xff] %v1429_v34 }
 0x394   : > { %v2023_v8 = vpop.f32.mrf.mxu1 }
 0x395   : > { %v1432_v13 = vadd.f32 %v2023_v8, %v1271_v42 }
 0x396   : > { %v1360_v11 = vpop.f32.mrf.mxu1 }
 0x397   : > { %1448 = vst [vmem:[#allocation4 + $0x18] sm:$0xff] %v1432_v13  ;;  %v1431_v57 = vadd.f32 %v1360_v11, %v1270_v54 }
 0x399   : > { %1447 = vst [vmem:[#allocation4 + $0x58] sm:$0xff] %v1431_v57 }
 0x39c   : > { %v2026_v16 = vpop.f32.mrf.mxu1 }
 0x39d   : > { %v1434_v5 = vadd.f32 %v2026_v16, %v1273_v32 }
 0x39e   : > { %v1370_v52 = vpop.f32.mrf.mxu1 }
 0x39f   : > { %1450 = vst [vmem:[#allocation4 + $0x68] sm:$0xff] %v1434_v5  ;;  %v1433_v44 = vadd.f32 %v1370_v52, %v1272_v18 }
 0x3a1   : > { %1449 = vst [vmem:[#allocation4 + $0x50] sm:$0xff] %v1433_v44 }
 0x3a4   : > { %v2029_v33 = vpop.f32.mrf.mxu1 }
 0x3a5   : > { %v1436_v58 = vadd.f32 %v2029_v33, %v1275_v40 }
 0x3a6   : > { %v1380_v60 = vpop.f32.mrf.mxu1 }
 0x3a7   : > { %1452 = vst [vmem:[#allocation4 + $0x48] sm:$0xff] %v1436_v58  ;;  %v1435_v31 = vadd.f32 %v1380_v60, %v1274_v47 }
 0x3a8   : > { %v2032_v21 = vpop.f32.mrf.mxu1 }
 0x3a9   : > { %1451 = vst [vmem:[#allocation4 + $0x8] sm:$0xff] %v1435_v31  ;;  %v1438_v61 = vadd.f32 %v2032_v21, %v1277_v10 }
 0x3aa   : > { %v1390_v63 = vpop.f32.mrf.mxu1 }
 0x3ab   : > { %1454 = vst [vmem:[#allocation4 + $0x20] sm:$0xff] %v1438_v61  ;;  %v1437_v2 = vadd.f32 %v1390_v63, %v1276_v6 }
 0x3ac   : > { %v2035_v9 = vpop.f32.mrf.mxu1 }
 0x3ad   : > { %1453 = vst [vmem:[#allocation4 + $0x40] sm:$0xff] %v1437_v2  ;;  %v1440_v43 = vadd.f32 %v2035_v9, %v1279_v38 }
 0x3ae   : > { %v1400_v25 = vpop.f32.mrf.mxu1 }
 0x3af   : > { %1456 = vst [vmem:[#allocation4 + $0x38] sm:$0xff] %v1440_v43  ;;  %v1439_v46 = vadd.f32 %v1400_v25, %v1278_v51 }
 0x3b0   : > { %v2038_v7 = vpop.f32.mrf.mxu1 }
 0x3b1   : > { %1455 = vst [vmem:[#allocation4 + $0x10] sm:$0xff] %v1439_v46  ;;  %v1442_v23 = vadd.f32 %v2038_v7, %v1281_v48 }
 0x3b2   : > { %v1410_v27 = vpop.f32.mrf.mxu1 }
 0x3b3   : > { %1458 = vst [vmem:[#allocation4 + $0x70] sm:$0xff] %v1442_v23  ;;  %v1441_v17 = vadd.f32 %v1410_v27, %v1280_v59 }
 0x3b4   : > { %v2041_v29 = vpop.f32.mrf.mxu1 }
 0x3b5   : > { %1457 = vst [vmem:[#allocation4 + $0x60] sm:$0xff] %v1441_v17  ;;  %v1444_v39 = vadd.f32 %v2041_v29, %v1283_v28  ;;  %1464 = sbr.rel (%p1859_p10) target bundleno = 1127 (0x467), region = 52 }
 0x3b6   : > { %v1420_v36 = vpop.f32.mrf.mxu1 }
 0x3b7   : > { %1460 = vst [vmem:[#allocation4 + $0x28] sm:$0xff] %v1444_v39  ;;  %v1443_v50 = vadd.f32 %v1420_v36, %v1282_v22 }
 0x3b9   : > { %1459 = vst [vmem:[#allocation4 + $0x78] sm:$0xff] %v1443_v50 }
 0x3ba   : > { %v1467_v49 = vld [vmem:[#allocation3 + $0x10] sm:$0xff]  ;;  %v1465_v4 = vld [vmem:[#allocation3] sm:$0xff]  ;;  %v1468_v56 = vld [vmem:[#allocation3 + $0x18] sm:$0xff]  ;;  %v2512_v55 = vmov 0  }
 0x3bb   : > { %2245 = vset.pattern.permute.xlu1 %v2512_v55  ;;  %2244 = vset.pattern.permute.xlu0 %v2512_v55  ;;  %v1483_v37 = vmul.f32 0.8, %v1467_v49  ;;  %v1481_v34 = vmul.f32 0.8, %v1465_v4  ;;  %v1484_v24 = vmul.f32 0.8, %v1468_v56 }
 0x3bc   : > { %v1466_v30 = vld [vmem:[#allocation3 + $0x8] sm:$0xff]  ;;  %v1469_v54 = vld [vmem:[#allocation3 + $0x20] sm:$0xff]  ;;  %v1472_v57 = vld [vmem:[#allocation3 + $0x38] sm:$0xff] }
 0x3bd   : > { %v1470_v42 = vld [vmem:[#allocation3 + $0x28] sm:$0xff]  ;;  %2246 = vrcp.f32 %v1483_v37  ;;  %v1482_v8 = vmul.f32 0.8, %v1466_v30  ;;  %v1485_v11 = vmul.f32 0.8, %v1469_v54  ;;  %v1471_v14 = vld [vmem:[#allocation3 + $0x30] sm:$0xff] }
 0x3be   : > { %2248 = vrcp.f32 %v1481_v34  ;;  %v1486_v13 = vmul.f32 0.8, %v1470_v42  ;;  %v1488_v3 = vmul.f32 0.8, %v1472_v57  ;;  %v1487_v32 = vmul.f32 0.8, %v1471_v14 }
 0x3bf   : > { %2250 = vrcp.f32 %v1484_v24  ;;  %v1474_v16 = vld [vmem:[#allocation3 + $0x48] sm:$0xff]  ;;  %v1473_v18 = vld [vmem:[#allocation3 + $0x40] sm:$0xff]  ;;  %v1476_v44 = vld [vmem:[#allocation3 + $0x58] sm:$0xff] }
 0x3c0   : > { %2252 = vrcp.f32 %v1482_v8  ;;  %v1490_v5 = vmul.f32 0.8, %v1474_v16  ;;  %v1489_v52 = vmul.f32 0.8, %v1473_v18  ;;  %v1475_v20 = vld [vmem:[#allocation3 + $0x50] sm:$0xff]  ;;  %v1478_v58 = vld [vmem:[#allocation3 + $0x68] sm:$0xff] }
 0x3c1   : > { %2254 = vrcp.f32 %v1486_v13  ;;  %v1492_v62 = vmul.f32 0.8, %v1476_v44  ;;  %v1491_v47 = vmul.f32 0.8, %v1475_v20  ;;  %v1477_v60 = vld [vmem:[#allocation3 + $0x60] sm:$0xff]  ;;  %v1480_v21 = vld [vmem:[#allocation3 + $0x78] sm:$0xff] }
 0x3c2   : > { %2256 = vrcp.f32 %v1485_v11  ;;  %v1494_v10 = vmul.f32 0.8, %v1478_v58  ;;  %v1493_v1 = vmul.f32 0.8, %v1477_v60  ;;  %v1479_v61 = vld [vmem:[#allocation3 + $0x70] sm:$0xff]  ;;  %v1531_v26 = vld [vmem:[#allocation4 + $0x58] sm:$0xff] }
 0x3c3   : > { %2258 = vrcp.f32 %v1488_v3  ;;  %v1496_v35 = vmul.f32 0.8, %v1480_v21  ;;  %v1495_v38 = vmul.f32 0.8, %v1479_v61  ;;  %v1529_v41 = vld [vmem:[#allocation4 + $0x30] sm:$0xff]  ;;  %v1532_v45 = vld [vmem:[#allocation4 + $0x18] sm:$0xff] }
 0x3c4   : > { %2260 = vrcp.f32 %v1487_v32  ;;  %v1530_v27 = vld [vmem:[#allocation4] sm:$0xff]  ;;  %v1534_v39 = vld [vmem:[#allocation4 + $0x68] sm:$0xff]  ;;  %v1533_v36 = vld [vmem:[#allocation4 + $0x50] sm:$0xff] }
 0x3c5   : > { %2262 = vrcp.f32 %v1490_v5  ;;  %v1536_v55 = vld [vmem:[#allocation4 + $0x48] sm:$0xff]  ;;  %v1538_v8 = vld [vmem:[#allocation4 + $0x20] sm:$0xff]  ;;  %v1540_v3 = vld [vmem:[#allocation4 + $0x38] sm:$0xff] }
 0x3c6   : > { %2264 = vrcp.f32 %v1489_v52  ;;  %v1535_v37 = vld [vmem:[#allocation4 + $0x8] sm:$0xff]  ;;  %v1537_v54 = vld [vmem:[#allocation4 + $0x40] sm:$0xff]  ;;  %v1539_v32 = vld [vmem:[#allocation4 + $0x10] sm:$0xff] }
 0x3c7   : > { %2266 = vrcp.f32 %v1492_v62  ;;  %v1542_v44 = vld [vmem:[#allocation4 + $0x70] sm:$0xff]  ;;  %v1541_v20 = vld [vmem:[#allocation4 + $0x60] sm:$0xff]  ;;  %v1543_v58 = vld [vmem:[#allocation4 + $0x78] sm:$0xff] }
 0x3c8   : > { %2268 = vrcp.f32 %v1491_v47  ;;  %v1544_v47 = vld [vmem:[#allocation4 + $0x28] sm:$0xff] }
 0x3c9   : > { %2270 = vrcp.f32 %v1494_v10 }
 0x3ca   : > { %v2247_v12 = vpop.eup %2246  ;;  %2272 = vrcp.f32 %v1493_v1 }
 0x3cb   : > { %v2249_v40 = vpop.eup %2248  ;;  %1557 = vperm.xlu1 %2245, %v2247_v12   ;;  %2274 = vrcp.f32 %v1496_v35 }
 0x3cc   : > { %v2251_v33 = vpop.eup %2250  ;;  %1547 = vperm.xlu0 %2244, %v2249_v40   ;;  %2276 = vrcp.f32 %v1495_v38 }
 0x3cd   : > { %v2253_v0 = vpop.eup %2252 }
 0x3ce   : > { %v2255_v31 = vpop.eup %2254 }
 0x3cf   : > { %1562 = vperm.xlu1 %2245, %v2251_v33   ;;  %v2257_v6 = vpop.eup %2256 }
 0x3d0   : > { %1552 = vperm.xlu0 %2244, %v2253_v0   ;;  %v2259_v63 = vpop.eup %2258 }
 0x3d1   : > { %v2261_v2 = vpop.eup %2260 }
 0x3d2   : > { %v2263_v19 = vpop.eup %2262 }
 0x3d3   : > { %1572 = vperm.xlu1 %2245, %v2255_v31   ;;  %v2265_v9 = vpop.eup %2264 }
 0x3d4   : > { %1567 = vperm.xlu0 %2244, %v2257_v6   ;;  %v2267_v51 = vpop.eup %2266 }
 0x3d5   : > { %v2269_v43 = vpop.eup %2268 }
 0x3d6   : > { %v2271_v15 = vpop.eup %2270 }
 0x3d7   : > { %1582 = vperm.xlu1 %2245, %v2259_v63   ;;  %v2273_v25 = vpop.eup %2272 }
 0x3d8   : > { %1577 = vperm.xlu0 %2244, %v2261_v2   ;;  %v2275_v48 = vpop.eup %2274 }
 0x3d9   : > { %v2277_v46 = vpop.eup %2276 }
 0x3db   : > { %1592 = vperm.xlu1 %2245, %v2263_v19  }
 0x3dc   : > { %1587 = vperm.xlu0 %2244, %v2265_v9  }
 0x3df   : > { %1602 = vperm.xlu1 %2245, %v2267_v51  }
 0x3e0   : > { %1597 = vperm.xlu0 %2244, %v2269_v43  }
 0x3e3   : > { %1612 = vperm.xlu1 %2245, %v2271_v15  }
 0x3e4   : > { %1607 = vperm.xlu0 %2244, %v2273_v25  }
 0x3e7   : > { %1622 = vperm.xlu1 %2245, %v2275_v48  }
 0x3e8   : > { %1617 = vperm.xlu0 %2244, %v2277_v46  }
 0x446   : > { %v1558_v7 = vpop.permute.xlu1 %1557 }
 0x447   : > { %v1627_v59 = vmul.f32 %v1558_v7, %v1531_v26  ;;  %v1548_v23 = vpop.permute.xlu0 %1547 }
 0x448   : > { %v1625_v53 = vmul.f32 %v1548_v23, %v1529_v41 }
 0x449   : > { %1643 = vst [vmem:[%s2815_s9 + $0x10] sm:$0xff] %v1627_v59 }
 0x44a   : > { %1641 = vst [vmem:[%s2815_s9] sm:$0xff] %v1625_v53  ;;  %v1563_v28 = vpop.permute.xlu1 %1562 }
 0x44b   : > { %v1628_v17 = vmul.f32 %v1563_v28, %v1532_v45  ;;  %v1553_v29 = vpop.permute.xlu0 %1552 }
 0x44c   : > { %v1626_v22 = vmul.f32 %v1553_v29, %v1530_v27 }
 0x44d   : > { %1644 = vst [vmem:[%s2815_s9 + $0x18] sm:$0xff] %v1628_v17 }
 0x44e   : > { %1642 = vst [vmem:[%s2815_s9 + $0x8] sm:$0xff] %v1626_v22  ;;  %v1573_v50 = vpop.permute.xlu1 %1572 }
 0x44f   : > { %v1630_v49 = vmul.f32 %v1573_v50, %v1534_v39  ;;  %v1568_v4 = vpop.permute.xlu0 %1567 }
 0x450   : > { %v1629_v56 = vmul.f32 %v1568_v4, %v1533_v36 }
 0x451   : > { %1646 = vst [vmem:[%s2815_s9 + $0x28] sm:$0xff] %v1630_v49 }
 0x452   : > { %1645 = vst [vmem:[%s2815_s9 + $0x20] sm:$0xff] %v1629_v56  ;;  %v1583_v34 = vpop.permute.xlu1 %1582 }
 0x453   : > { %v1632_v24 = vmul.f32 %v1583_v34, %v1536_v55  ;;  %v1578_v30 = vpop.permute.xlu0 %1577 }
 0x454   : > { %v1631_v42 = vmul.f32 %v1578_v30, %v1535_v37 }
 0x455   : > { %1648 = vst [vmem:[%s2815_s9 + $0x38] sm:$0xff] %v1632_v24 }
 0x456   : > { %1647 = vst [vmem:[%s2815_s9 + $0x30] sm:$0xff] %v1631_v42  ;;  %v1593_v13 = vpop.permute.xlu1 %1592 }
 0x457   : > { %v1634_v11 = vmul.f32 %v1593_v13, %v1538_v8  ;;  %v1588_v57 = vpop.permute.xlu0 %1587 }
 0x458   : > { %v1633_v14 = vmul.f32 %v1588_v57, %v1537_v54 }
 0x459   : > { %1650 = vst [vmem:[%s2815_s9 + $0x48] sm:$0xff] %v1634_v11 }
 0x45a   : > { %1649 = vst [vmem:[%s2815_s9 + $0x40] sm:$0xff] %v1633_v14  ;;  %v1603_v16 = vpop.permute.xlu1 %1602 }
 0x45b   : > { %v1636_v18 = vmul.f32 %v1603_v16, %v1540_v3  ;;  %v1598_v5 = vpop.permute.xlu0 %1597 }
 0x45c   : > { %v1635_v52 = vmul.f32 %v1598_v5, %v1539_v32 }
 0x45d   : > { %1652 = vst [vmem:[%s2815_s9 + $0x58] sm:$0xff] %v1636_v18 }
 0x45e   : > { %1651 = vst [vmem:[%s2815_s9 + $0x50] sm:$0xff] %v1635_v52  ;;  %v1613_v12 = vpop.permute.xlu1 %1612 }
 0x45f   : > { %v1638_v40 = vmul.f32 %v1613_v12, %v1542_v44  ;;  %v1608_v62 = vpop.permute.xlu0 %1607 }
 0x460   : > { %v1637_v33 = vmul.f32 %v1608_v62, %v1541_v20 }
 0x461   : > { %1654 = vst [vmem:[%s2815_s9 + $0x68] sm:$0xff] %v1638_v40 }
 0x462   : > { %1653 = vst [vmem:[%s2815_s9 + $0x60] sm:$0xff] %v1637_v33  ;;  %v1623_v0 = vpop.permute.xlu1 %1622 }
 0x463   : > { %v1640_v60 = vmul.f32 %v1623_v0, %v1544_v47  ;;  %v1618_v10 = vpop.permute.xlu0 %1617 }
 0x464   : > { %v1639_v31 = vmul.f32 %v1618_v10, %v1543_v58 }
 0x465   : > { %1656 = vst [vmem:[%s2815_s9 + $0x78] sm:$0xff] %v1640_v60 }
 0x466   : > { %1655 = vst [vmem:[%s2815_s9 + $0x70] sm:$0xff] %v1639_v31 }
 0x467 PF: > { %s3564_s15 = sld [smem:[#allocation21_spill]]  ;;  %s1673_s6 = sshll.u32 %s2815_s9, 4  ;;  %s3385_s6 = int_to_ptr.vmem [resolvable:$true] %s1673_s6 }
 0x468   : > { %s3565_s4 = sld [smem:[#allocation22_spill]]  ;;  %s1658_s16 = scalar_lea.sflag [#allocation9], %s2795_s12 }
 0x469   : > { %s3566_s13 = sld [smem:[#allocation29_spill]]  ;;  %s2362_s0 = scalar_lea.vmem %s3385_s6, 2048 }
 0x46a   : > { %s3567_s26 = sld [smem:[#allocation40_spill]]  ;;  %p2363_p9 = scmp.ne.s32.totalorder %s3385_s6, %s2362_s0 }
 0x46b   : > { %s2513_s24 = smov [#allocation13]  }
 0x46c   : > { %s2366_s9 = sshll.u32 %s2513_s24, 4  ;;  %s2367_s9 = int_to_ptr.vmem [resolvable:$false] %s2366_s9 }
 0x46d   : > { %s1861_s3 = sshll.u32 %s3564_s15, 4  ;;  %s2368_s7 = scalar_lea.vmem %s2367_s9, 4096 }
 0x46e   : > { %s1862_s5 = sshll.u32 %s3565_s4, 5  ;;  %p2369_p6 = scmp.lt.s32.totalorder %s3385_s6, %s2367_s9 }
 0x46f   : > { %s1670_s20 = sadd.s32 %s1862_s5, %s1861_s3  ;;  %p3569_p1 = scmp.ne.s32.totalorder %s3566_s13, 0 }
 0x470   : > { %s1863_s2 = sshll.u32 %s1670_s20, 7  ;;  %s3568_s11 = smov %s3567_s26 }
 0x471   : > { %s3390_s23 = scalar_lea.hbm %s3567_s26, %s1863_s2  ;;  %p2364_p13 = pnand %p2363_p9, %p3569_p1 }
 0x472   : > { %p2370_p0 = scmp.lt.s32.totalorder %s2368_s7, %s2362_s0 }
 0x473   : > { %p2365_p7 = pneg %p2364_p13 }
 0x474   : > { %p2371_p11 = por %p2370_p0, %p2369_p6 }
 0x476   : > { %p2372_p4 = pnand %p2371_p11, %p2365_p7 }
 0x478   : > { %2375 = shalt.err (!%p2372_p4)
}
 0x479   : > { %s2376_s10 = scalar_lea.hbm %s3390_s23, 2048  ;;  %s2380_s15 = scalar_lea.hbm %s3568_s11, 8192 }
 0x47a   : > { %p2377_p3 = scmp.ne.s32.totalorder %s3390_s23, %s2376_s10  ;;  %p2381_p8 = scmp.lt.s32.totalorder %s3390_s23, %s3568_s11 }
 0x47b   : > { %p2382_p12 = scmp.lt.s32.totalorder %s2380_s15, %s2376_s10 }
 0x47c   : > { %p2378_p5 = pnand %p2377_p3, %p3569_p1 }
 0x47d   : > { %p2383_p10 = por %p2382_p12, %p2381_p8 }
 0x47e   : > { %p2379_p2 = pneg %p2378_p5 }
 0x480   : > { %p2384_p9 = pnand %p2383_p10, %p2379_p2 }
 0x482   : > { %2387 = shalt.err (!%p2384_p9)
}
 0x483   : > { %s2514_s5 = smov 128   ;;  %s2515_s20 = smov 8  }
 0x484   : > { %2048 = dma.vmem_to_hbm [thread:$0]  (%p3569_p1), %s3385_s6, 2048, %s3390_s23, %s1658_s16, %s2514_s5, %s2514_s5, %s2515_s20  }
 0x485 PF: > { %s3570_s2 = sld [smem:[#allocation18_spill]]  ;;  %p2065_p13 = scmp.ge.s32.totalorder %s2502_s28, 2 }
 0x486   : > { %s3571_s29 = sld [smem:[#allocation31_spill]] }
 0x48b   : > { %s1688_s21 = sand.u32 1, %s3570_s2  }
 0x48c   : > { %p3572_p7 = scmp.ne.s32.totalorder %s3571_s29, 0  ;;  %s1689_s26 = scalar_lea.sflag [#allocation9], %s1688_s21 }
 0x48e   : > { %p2061_p6 = pnand %p2065_p13, %p3572_p7 }
 0x490   : > { %p2062_p0 = pneg %p2061_p6 }
 0x492   : > { %2449 = dma.done.wait (%p2062_p0), %s1689_s26, 2048  }
 0x493   : > { %2451 = vsyncadd (%p2062_p0), %s1689_s26, 4294965248  ;;  %s24_s28 = sadd.s32 1, %s2502_s28   ;;  %s3574_s17 = sld [smem:[#allocation17_spill]] }
 0x494   : > { %p3420_p11 = scmp.ge.s32.totalorder %s24_s28, 10   ;;  %s3575_s20 = sld [smem:[#allocation19_spill]] }
 0x495   : > { %s3576_s12 = smov %s2742_s18  ;;  %s3577_s13 = sld [smem:[#allocation23_spill]] }
 0x496   : > { %s3578_s26 = sld [smem:[#allocation28_spill]]  ;;  %s3581_s18 = smov %s2462_s19 }
 0x497   : > { %s3579_s6 = sld [smem:[#allocation30_spill]]  ;;  %s3582_s19 = smov %s2747_s8 }
 0x498   : > { %s3583_s21 = smov %s2474_s22  ;;  %s3584_s22 = smov %s3576_s12 }
 0x499   : > { %s3585_s23 = smov %s2490_s25  ;;  %s3587_s24 = smov %s2498_s27 }
 0x49a   : > { %s3588_s25 = smov %s3591_s30  ;;  %23 = sbr.rel (!%p3420_p11) target bundleno = 17 (0x11), region = 109 }
 0x49b   : > { %s3586_s0 = smov %s3577_s13 }
 0x49d   : > { %s3589_s27 = smov %s3579_s6 }
 0x49f   :  { %1694 = vsyncpa [#allocation8], 1 }
 0x4a0   :  { %1696 = vsyncpa [#allocation8 + $0x1], 1 }
 0x4a1   :  { %1697 = vsyncpa [#allocation11], 1 }
 0x4a2   :  { %1699 = vsyncpa [#allocation11 + $0x1], 1 }
 0x4a3   :  { %1700 = vsyncpa [#allocation9], 1 }
 0x4a4   :  { %1702 = vsyncpa [#allocation9 + $0x1], 1 }

</bundles_post_ra>
